<compile_context>
chip_gen: v7x
topology: tpu7x:2x2x1
jax: 0.10.0
libtpu: 0.0.40
codegen_flags: <defaults>
</compile_context>

<pallas_src>
import functools

import jax
import jax.numpy as jnp
import numpy as np
from jax.experimental import pallas as pl
from jax.experimental.pallas import tpu as pltpu

EPS = 1e-5
LANE = 128


def _round_up(n, m):
    return (n + m - 1) // m * m


def _silu(x):
    return x * jax.nn.sigmoid(x)


def _masked_ln_silu(z, w, b, lane_mask, inv_n):
    """LayerNorm over the last dim restricted to the real lanes, then SiLU.

    Assumes padded lanes of z are exactly zero (maintained throughout the kernel);
    lane_mask is a {0,1} float row, w/b are zero-padded so padded lanes stay zero.
    """
    mean = jnp.sum(z, axis=-1, keepdims=True) * inv_n
    cen = (z - mean) * lane_mask
    var = jnp.sum(cen * cen, axis=-1, keepdims=True) * inv_n
    y = cen * jax.lax.rsqrt(var + EPS) * w + b
    return y * jax.nn.sigmoid(y)


def _block_kernel(x_ref, wp_ref, bp_ref, lnh_w_ref, lnh_b_ref,
                  w0_ref, w1_ref, bc_ref,
                  wf_ref, bf_ref, lnc_w_ref, lnc_b_ref,
                  o_ref, *, dilations, seq_len, h_real, c_real):
    Mt, Cp = x_ref.shape
    Hp = wp_ref.shape[1]
    bf16 = jnp.bfloat16

    x0 = x_ref[...]                                            # (Mt, Cp) f32, lane-dense

    h_lane = (jax.lax.broadcasted_iota(jnp.int32, (1, Hp), 1) < h_real).astype(jnp.float32)
    c_lane = (jax.lax.broadcasted_iota(jnp.int32, (1, Cp), 1) < c_real).astype(jnp.float32)
    # time index of every flattened row inside this tile (tiles are batch-aligned)
    t_idx = jax.lax.broadcasted_iota(jnp.int32, (Mt, 1), 0) % seq_len
    inv_h = 1.0 / float(h_real)
    inv_c = 1.0 / float(c_real)

    # conv_proj (1x1 conv == channel matmul) + LayerNormChannel + SiLU
    h = jnp.dot(x0.astype(bf16), wp_ref[...],
                preferred_element_type=jnp.float32) + bp_ref[...]
    h = _masked_ln_silu(h, lnh_w_ref[...], lnh_b_ref[...], h_lane, inv_h)

    for l, d in enumerate(dilations):
        # ZeroPad1d((0, d)) + Conv1d(k=2, dilation=d, groups=g) + Conv1d(k=1), fused:
        #   y[t] = (W0.h[t] + W1.h[t+d] + bg) . W2 + b2
        #        =  h[t] @ (W0 W2) + h[t+d] @ (W1 W2) + (bg W2 + b2)
        # with h[t+d] = 0 for t+d >= T.  Rows are (batch, t) flattened; the iota mask
        # zeroes rows with t >= T-d, which also removes cross-batch/roll-wraparound leakage.
        tap_mask = (t_idx < seq_len - d).astype(jnp.float32)
        h_shift = pltpu.roll(h, Mt - d, axis=0) * tap_mask
        y = (jnp.dot(h.astype(bf16), w0_ref[l], preferred_element_type=jnp.float32)
             + jnp.dot(h_shift.astype(bf16), w1_ref[l], preferred_element_type=jnp.float32)
             + bc_ref[l])
        h = h + y                                              # residual (f32)

    # normal_active again (same LayerNorm params)
    h = _masked_ln_silu(h, lnh_w_ref[...], lnh_b_ref[...], h_lane, inv_h)

    # conv_ff_norm: 1x1 conv back to C_in + LayerNormChannel + SiLU, then residual with x0
    out = jnp.dot(h.astype(bf16), wf_ref[...],
                  preferred_element_type=jnp.float32) + bf_ref[...]
    out = _masked_ln_silu(out, lnc_w_ref[...], lnc_b_ref[...], c_lane, inv_c)
    o_ref[...] = (x0 + out).astype(o_ref.dtype)


def linear_convs_block(x, kp, dilations):
    """x: (B, T, C_in) -> (B, T, C_in). kp: padded kernel-layout params (to_kernel_params)."""
    B, T, C_in = x.shape
    Cp, Hp = kp['wp'].shape
    L = int(kp['w0'].shape[0])
    H = kp['n_hidden']
    assert C_in == kp['n_in']

    # Fold as many batch elements as possible into one row tile (target <= 512 rows),
    # keeping row tiles aligned to batch boundaries so the in-kernel t-index mask is exact.
    bt = 1
    for cand in range(1, B + 1):
        if B % cand == 0 and cand * T <= 512:
            bt = cand
    Mt = bt * T
    Mtot = B * T
    assert Mtot % Mt == 0 and Mt % 8 == 0
    grid = (Mtot // Mt,)

    # lane-dense, row-flattened input; padded channel lanes are exactly zero
    x_flat = jnp.pad(x.reshape(Mtot, C_in).astype(jnp.float32),
                     ((0, 0), (0, Cp - C_in)))

    kernel = functools.partial(_block_kernel, dilations=tuple(dilations),
                               seq_len=T, h_real=H, c_real=C_in)

    args = (x_flat,
            kp['wp'], kp['bp'], kp['lnh_w'], kp['lnh_b'],
            kp['w0'], kp['w1'], kp['bc'],
            kp['wf'], kp['bf'], kp['lnc_w'], kp['lnc_b'])

    def const_spec(a):
        zeros = (0,) * a.ndim
        return pl.BlockSpec(a.shape, lambda i, z=zeros: z)

    row_spec = pl.BlockSpec((Mt, Cp), lambda i: (i, 0))
    in_specs = [row_spec] + [const_spec(a) for a in args[1:]]

    flops = 2 * Mtot * (Cp * Hp + 2 * L * Hp * Hp + Hp * Cp)
    transcendentals = Mtot * (2 * Hp + Cp)
    bytes_accessed = sum(int(a.size) * a.dtype.itemsize for a in args) + Mtot * Cp * 4

    out = pl.pallas_call(
        kernel,
        out_shape=jax.ShapeDtypeStruct((Mtot, Cp), jnp.float32),
        grid=grid,
        in_specs=in_specs,
        out_specs=row_spec,
        input_output_aliases={0: 0},   # x_flat is fully consumed before the store
        compiler_params=pltpu.CompilerParams(
            dimension_semantics=("parallel",),
            vmem_limit_bytes=48 * 1024 * 1024),
        cost_estimate=pl.CostEstimate(flops=flops,
                                      transcendentals=transcendentals,
                                      bytes_accessed=bytes_accessed),
    )(*args)

    return out[:, :C_in].reshape(B, T, C_in)


# ----------------- parameter construction (plain JAX glue) -----------------

def init_params(key, C_in, H, L, groups):
    """Deterministic synthetic parameters in PyTorch layouts."""
    Cg = H // groups
    ks = jax.random.split(key, 8 + 4 * L)

    def nrm(k, shape, scale):
        return jax.random.normal(k, shape, jnp.float32) * scale

    p = {
        'conv_proj_w': nrm(ks[0], (H, C_in, 1), 0.3),
        'conv_proj_b': nrm(ks[1], (H,), 0.1),
        'lnh_w': 1.0 + nrm(ks[2], (H,), 0.1),
        'lnh_b': nrm(ks[3], (H,), 0.1),
        'wg': [nrm(ks[4 + 4 * l], (H, Cg, 2), 0.3) for l in range(L)],
        'bg': [nrm(ks[5 + 4 * l], (H,), 0.1) for l in range(L)],
        'w2': [nrm(ks[6 + 4 * l], (H, H, 1), 0.2) for l in range(L)],
        'b2': [nrm(ks[7 + 4 * l], (H,), 0.1) for l in range(L)],
    }
    base = 4 + 4 * L
    p['wf'] = nrm(ks[base], (C_in, H, 1), 0.2)
    p['bf'] = nrm(ks[base + 1], (C_in,), 0.1)
    p['lnc_w'] = 1.0 + nrm(ks[base + 2], (C_in,), 0.1)
    p['lnc_b'] = nrm(ks[base + 3], (C_in,), 0.1)
    return p


def _bf16_round(a):
    return a.astype(jnp.bfloat16).astype(jnp.float32)


def quantize_matmul_weights(p):
    """Round-trip the matmul weights through bf16 so the f32 reference and the bf16 kernel
    evaluate (nearly) identical weight values (the kernel stores them in bf16)."""
    q = dict(p)
    q['conv_proj_w'] = _bf16_round(p['conv_proj_w'])
    q['wg'] = [_bf16_round(w) for w in p['wg']]
    q['w2'] = [_bf16_round(w) for w in p['w2']]
    q['wf'] = _bf16_round(p['wf'])
    return q


def to_kernel_params(p, groups):
    """PyTorch-layout params -> lane-dense, zero-padded, fused, bf16 kernel-layout params."""
    H, C_in, _ = p['conv_proj_w'].shape
    Cg = H // groups
    L = len(p['wg'])
    Hp = _round_up(H, LANE)
    Cp = _round_up(C_in, LANE)
    bf16 = jnp.bfloat16
    prec = jax.lax.Precision.HIGHEST

    def pad2(a, rows, cols):
        return jnp.pad(a, ((0, rows - a.shape[0]), (0, cols - a.shape[1])))

    def padrow(v, cols):                        # (n,) -> (1, cols), zero padded
        return jnp.pad(v[None, :], ((0, 0), (0, cols - v.shape[0])))

    def block_diag_tap(wg, tap):
        # grouped Conv1d weight (H, Cg, 2) -> block-diagonal (H_in, H_out) matrix, one tap.
        # NOTE: dense block-diag is fine while Hp <= the 128 MXU dim; the following 1x1 conv
        # is fused in anyway, making the per-layer tap matrices dense regardless of groups.
        blocks = [wg[g * Cg:(g + 1) * Cg, :, tap].T for g in range(groups)]
        return jax.scipy.linalg.block_diag(*blocks)

    # Fuse each layer's 1x1 conv (w2, b2) into the two dilated-conv taps:
    #   (h@W0 + h_s@W1 + bg)@W2 + b2 == h@(W0 W2) + h_s@(W1 W2) + (bg W2 + b2)
    w0c, w1c, bc = [], [], []
    for l in range(L):
        w2 = p['w2'][l][:, :, 0].T                               # (H_in, H_out)
        w0 = block_diag_tap(p['wg'][l], 0)
        w1 = block_diag_tap(p['wg'][l], 1)
        w0c.append(pad2(jnp.dot(w0, w2, precision=prec), Hp, Hp))
        w1c.append(pad2(jnp.dot(w1, w2, precision=prec), Hp, Hp))
        bc.append(padrow(jnp.dot(p['bg'][l], w2, precision=prec) + p['b2'][l], Hp))

    return {
        'n_in': int(C_in), 'n_hidden': int(H),
        # matmul weights in bf16 (f32 accumulation in-kernel); biases / LN params in f32.
        'wp': pad2(p['conv_proj_w'][:, :, 0].T, Cp, Hp).astype(bf16),        # (Cp, Hp)
        'bp': padrow(p['conv_proj_b'], Hp),
        'lnh_w': padrow(p['lnh_w'], Hp),   # zero-padded so padded lanes stay 0 after LN
        'lnh_b': padrow(p['lnh_b'], Hp),
        'w0': jnp.stack(w0c).astype(bf16),                                   # (L, Hp, Hp)
        'w1': jnp.stack(w1c).astype(bf16),                                   # (L, Hp, Hp)
        'bc': jnp.stack(bc),                                                 # (L, 1, Hp)
        'wf': pad2(p['wf'][:, :, 0].T, Hp, Cp).astype(bf16),                 # (Hp, Cp)
        'bf': padrow(p['bf'], Cp),
        'lnc_w': padrow(p['lnc_w'], Cp),
        'lnc_b': padrow(p['lnc_b'], Cp),
    }


# ----------------- pure-JAX reference (mirrors the PyTorch module) -----------------

def reference(x, p, dilations, groups):
    prec = jax.lax.Precision.HIGHEST
    x0 = jnp.transpose(x, (0, 2, 1))  # (B, C_in, T)  == x.transpose(1, 2)

    def ln_channel(z, w, b):
        zt = jnp.transpose(z, (0, 2, 1))
        mean = zt.mean(-1, keepdims=True)
        var = jnp.square(zt - mean).mean(-1, keepdims=True)
        out = (zt - mean) / jnp.sqrt(var + EPS) * w + b
        return jnp.transpose(out, (0, 2, 1))

    def conv1x1(z, w, b):
        return jnp.einsum('bit,oi->bot', z, w[:, :, 0], precision=prec) + b[None, :, None]

    h = _silu(ln_channel(conv1x1(x0, p['conv_proj_w'], p['conv_proj_b']),
                         p['lnh_w'], p['lnh_b']))
    for l, d in enumerate(dilations):
        pad = (2 + 2 * (d - 1) - 1) // 2 + 1          # ZeroPad1d right pad (== d)
        z = jnp.pad(h, ((0, 0), (0, 0), (0, pad)))
        y = jax.lax.conv_general_dilated(
            z, p['wg'][l], window_strides=(1,), padding='VALID',
            rhs_dilation=(d,), dimension_numbers=('NCH', 'OIH', 'NCH'),
            feature_group_count=groups, precision=prec)
        y = y + p['bg'][l][None, :, None]
        y = conv1x1(y, p['w2'][l], p['b2'][l])
        h = h + y
    h = _silu(ln_channel(h, p['lnh_w'], p['lnh_b']))
    out = x0 + _silu(ln_channel(conv1x1(h, p['wf'], p['bf']), p['lnc_w'], p['lnc_b']))
    return jnp.transpose(out, (0, 2, 1))


if __name__ == "__main__":
    B, T, C_in, H, L, groups = 2, 16, 8, 32, 3, 4
    dilations = tuple(2 ** l for l in range(L))       # 1, 2, 4

    key = jax.random.PRNGKey(0)
    kx, kparams = jax.random.split(key)
    x = jax.random.normal(kx, (B, T, C_in), jnp.float32)

    # bf16-round-trip the matmul weights once so kernel (bf16) and reference (f32, HIGHEST)
    # evaluate near-identical weight values; the remaining delta is bf16 activation rounding
    # at the MXU inputs plus bf16 rounding of the fused (W0 W2)/(W1 W2) composites, both
    # covered by the tolerance below.
    params = quantize_matmul_weights(init_params(kparams, C_in, H, L, groups))
    kp = to_kernel_params(params, groups)

    out = jax.block_until_ready(linear_convs_block(x, kp, dilations))

    ref = reference(x, params, dilations, groups)
    np.testing.assert_allclose(np.asarray(out), np.asarray(ref), rtol=5e-2, atol=5e-2)
    print("KERNEL_OK")
</pallas_src>

<mosaic_0001>
module attributes {stable_mosaic.version = 11 : i64} {
  func.func @_block_kernel(%arg0: i32, %arg1: memref<32x128xf32, #tpu.memory_space<vmem>>, %arg2: memref<128x128xbf16, #tpu.memory_space<vmem>>, %arg3: memref<1x128xf32, #tpu.memory_space<vmem>>, %arg4: memref<1x128xf32, #tpu.memory_space<vmem>>, %arg5: memref<1x128xf32, #tpu.memory_space<vmem>>, %arg6: memref<3x128x128xbf16, #tpu.memory_space<vmem>>, %arg7: memref<3x128x128xbf16, #tpu.memory_space<vmem>>, %arg8: memref<3x1x128xf32, #tpu.memory_space<vmem>>, %arg9: memref<128x128xbf16, #tpu.memory_space<vmem>>, %arg10: memref<1x128xf32, #tpu.memory_space<vmem>>, %arg11: memref<1x128xf32, #tpu.memory_space<vmem>>, %arg12: memref<1x128xf32, #tpu.memory_space<vmem>>, %arg13: memref<32x128xf32, #tpu.memory_space<vmem>>) attributes {dimension_semantics = [#tpu.dimension_semantics<parallel>], iteration_bounds = array<i64: 1>, scalar_prefetch = 0 : i64, scratch_operands = 0 : i64, tpu.core_type = #tpu.core_type<tc>, window_params = [{transform_indices = @transform_0, window_bounds = array<i64: 32, 128>}, {pipeline_mode = #tpu.pipeline_mode<synchronous>, transform_indices = @transform_1, window_bounds = array<i64: 128, 128>}, {pipeline_mode = #tpu.pipeline_mode<synchronous>, transform_indices = @transform_2, window_bounds = array<i64: 1, 128>}, {pipeline_mode = #tpu.pipeline_mode<synchronous>, transform_indices = @transform_3, window_bounds = array<i64: 1, 128>}, {pipeline_mode = #tpu.pipeline_mode<synchronous>, transform_indices = @transform_4, window_bounds = array<i64: 1, 128>}, {pipeline_mode = #tpu.pipeline_mode<synchronous>, transform_indices = @transform_5, window_bounds = array<i64: 3, 128, 128>}, {pipeline_mode = #tpu.pipeline_mode<synchronous>, transform_indices = @transform_6, window_bounds = array<i64: 3, 128, 128>}, {pipeline_mode = #tpu.pipeline_mode<synchronous>, transform_indices = @transform_7, window_bounds = array<i64: 3, 1, 128>}, {pipeline_mode = #tpu.pipeline_mode<synchronous>, transform_indices = @transform_8, window_bounds = array<i64: 128, 128>}, {pipeline_mode = #tpu.pipeline_mode<synchronous>, transform_indices = @transform_9, window_bounds = array<i64: 1, 128>}, {pipeline_mode = #tpu.pipeline_mode<synchronous>, transform_indices = @transform_10, window_bounds = array<i64: 1, 128>}, {pipeline_mode = #tpu.pipeline_mode<synchronous>, transform_indices = @transform_11, window_bounds = array<i64: 1, 128>}, {transform_indices = @transform_12, window_bounds = array<i64: 32, 128>}]} {
    %c0 = arith.constant 0 : index
    %c0_0 = arith.constant 0 : index
    %0 = vector.load %arg1[%c0, %c0_0] : memref<32x128xf32, #tpu.memory_space<vmem>>, vector<32x128xf32>
    %1 = tpu.iota {dimensions = array<i32: 1>} : vector<1x128xi32>
    %c32_i32 = arith.constant 32 : i32
    %2 = vector.broadcast %c32_i32 : i32 to vector<1x128xi32>
    %3 = arith.cmpi slt, %1, %2 : vector<1x128xi32>
    %4 = arith.extui %3 : vector<1x128xi1> to vector<1x128xi32>
    %5 = arith.sitofp %4 : vector<1x128xi32> to vector<1x128xf32>
    %6 = tpu.iota {dimensions = array<i32: 1>} : vector<1x128xi32>
    %c8_i32 = arith.constant 8 : i32
    %7 = vector.broadcast %c8_i32 : i32 to vector<1x128xi32>
    %8 = arith.cmpi slt, %6, %7 : vector<1x128xi32>
    %9 = arith.extui %8 : vector<1x128xi1> to vector<1x128xi32>
    %10 = arith.sitofp %9 : vector<1x128xi32> to vector<1x128xf32>
    %11 = tpu.iota {dimensions = array<i32: 0>} : vector<32x1xi32>
    %c16_i32 = arith.constant 16 : i32
    %c0_i32 = arith.constant 0 : i32
    %12 = arith.cmpi eq, %c16_i32, %c0_i32 : i32
    %c1_i32 = arith.constant 1 : i32
    %13 = arith.select %12, %c1_i32, %c16_i32 : i32
    %14 = vector.broadcast %13 : i32 to vector<32x1xi32>
    %15 = arith.remsi %11, %14 : vector<32x1xi32>
    %c0_i32_1 = arith.constant 0 : i32
    %16 = vector.broadcast %c0_i32_1 : i32 to vector<32x1xi32>
    %17 = arith.cmpi ne, %15, %16 : vector<32x1xi32>
    %c0_i32_2 = arith.constant 0 : i32
    %18 = vector.broadcast %c0_i32_2 : i32 to vector<32x1xi32>
    %19 = arith.cmpi slt, %15, %18 : vector<32x1xi32>
    %c0_i32_3 = arith.constant 0 : i32
    %20 = arith.cmpi slt, %13, %c0_i32_3 : i32
    %21 = vector.broadcast %20 : i1 to vector<32x1xi1>
    %22 = vector.broadcast %21 : vector<32x1xi1> to vector<32x1xi1>
    %23 = arith.xori %19, %22 : vector<32x1xi1>
    %24 = arith.andi %23, %17 : vector<32x1xi1>
    %25 = vector.broadcast %13 : i32 to vector<32x1xi32>
    %26 = arith.addi %15, %25 : vector<32x1xi32>
    %27 = arith.select %24, %26, %15 : vector<32x1xi1>, vector<32x1xi32>
    %28 = arith.truncf %0 : vector<32x128xf32> to vector<32x128xbf16>
    %c0_4 = arith.constant 0 : index
    %c0_5 = arith.constant 0 : index
    %29 = vector.load %arg2[%c0_4, %c0_5] : memref<128x128xbf16, #tpu.memory_space<vmem>>, vector<128x128xbf16>
    %cst = arith.constant dense<0.000000e+00> : vector<32x128xf32>
    %30 = tpu.matmul %28, %29, %cst {dimension_numbers = #tpu.dot_dimension_numbers<[1], [0], [0], [1], [0, 0, 1, 1], [], []>} : vector<32x128xbf16>, vector<128x128xbf16>, vector<32x128xf32> -> vector<32x128xf32>
    %c0_6 = arith.constant 0 : index
    %c0_7 = arith.constant 0 : index
    %31 = vector.load %arg3[%c0_6, %c0_7] : memref<1x128xf32, #tpu.memory_space<vmem>>, vector<1x128xf32>
    %32 = vector.broadcast %31 : vector<1x128xf32> to vector<32x128xf32>
    %33 = arith.addf %30, %32 : vector<32x128xf32>
    %c0_8 = arith.constant 0 : index
    %c0_9 = arith.constant 0 : index
    %34 = vector.load %arg4[%c0_8, %c0_9] : memref<1x128xf32, #tpu.memory_space<vmem>>, vector<1x128xf32>
    %c0_10 = arith.constant 0 : index
    %c0_11 = arith.constant 0 : index
    %35 = vector.load %arg5[%c0_10, %c0_11] : memref<1x128xf32, #tpu.memory_space<vmem>>, vector<1x128xf32>
    %cst_12 = arith.constant dense<0.000000e+00> : vector<32xf32>
    %36 = vector.multi_reduction <add>, %33, %cst_12 [1] : vector<32x128xf32> to vector<32xf32>
    %37 = vector.shape_cast %36 : vector<32xf32> to vector<32x1xf32>
    %cst_13 = arith.constant 3.125000e-02 : f32
    %38 = vector.broadcast %cst_13 : f32 to vector<32x1xf32>
    %39 = arith.mulf %37, %38 : vector<32x1xf32>
    %40 = vector.broadcast %39 : vector<32x1xf32> to vector<32x128xf32>
    %41 = arith.subf %33, %40 : vector<32x128xf32>
    %42 = vector.broadcast %5 : vector<1x128xf32> to vector<32x128xf32>
    %43 = arith.mulf %41, %42 : vector<32x128xf32>
    %44 = arith.mulf %43, %43 : vector<32x128xf32>
    %cst_14 = arith.constant dense<0.000000e+00> : vector<32xf32>
    %45 = vector.multi_reduction <add>, %44, %cst_14 [1] : vector<32x128xf32> to vector<32xf32>
    %46 = vector.shape_cast %45 : vector<32xf32> to vector<32x1xf32>
    %cst_15 = arith.constant 3.125000e-02 : f32
    %47 = vector.broadcast %cst_15 : f32 to vector<32x1xf32>
    %48 = arith.mulf %46, %47 : vector<32x1xf32>
    %cst_16 = arith.constant 9.99999974E-6 : f32
    %49 = vector.broadcast %cst_16 : f32 to vector<32x1xf32>
    %50 = arith.addf %48, %49 : vector<32x1xf32>
    %51 = math.rsqrt %50 : vector<32x1xf32>
    %52 = vector.broadcast %51 : vector<32x1xf32> to vector<32x128xf32>
    %53 = arith.mulf %43, %52 : vector<32x128xf32>
    %54 = vector.broadcast %34 : vector<1x128xf32> to vector<32x128xf32>
    %55 = arith.mulf %53, %54 : vector<32x128xf32>
    %56 = vector.broadcast %35 : vector<1x128xf32> to vector<32x128xf32>
    %57 = arith.addf %55, %56 : vector<32x128xf32>
    %58 = arith.negf %57 : vector<32x128xf32>
    %59 = math.exp %58 : vector<32x128xf32>
    %cst_17 = arith.constant 1.000000e+00 : f32
    %60 = vector.broadcast %cst_17 : f32 to vector<32x128xf32>
    %61 = arith.addf %60, %59 : vector<32x128xf32>
    %62 = arith.divf %60, %61 : vector<32x128xf32>
    %63 = arith.mulf %57, %62 : vector<32x128xf32>
    %c15_i32 = arith.constant 15 : i32
    %64 = vector.broadcast %c15_i32 : i32 to vector<32x1xi32>
    %65 = arith.cmpi slt, %27, %64 : vector<32x1xi32>
    %66 = arith.extui %65 : vector<32x1xi1> to vector<32x1xi32>
    %67 = arith.sitofp %66 : vector<32x1xi32> to vector<32x1xf32>
    %c31_i32 = arith.constant 31 : i32
    %68 = tpu.dynamic_rotate %63 by %c31_i32 dim 0 : vector<32x128xf32>, i32 -> vector<32x128xf32>
    %69 = vector.broadcast %67 : vector<32x1xf32> to vector<32x128xf32>
    %70 = arith.mulf %68, %69 : vector<32x128xf32>
    %71 = arith.truncf %63 : vector<32x128xf32> to vector<32x128xbf16>
    %c0_18 = arith.constant 0 : index
    %c0_19 = arith.constant 0 : index
    %c0_20 = arith.constant 0 : index
    %72 = vector.load %arg6[%c0_18, %c0_19, %c0_20] : memref<3x128x128xbf16, #tpu.memory_space<vmem>>, vector<1x128x128xbf16>
    %73 = vector.shape_cast %72 : vector<1x128x128xbf16> to vector<128x128xbf16>
    %cst_21 = arith.constant dense<0.000000e+00> : vector<32x128xf32>
    %74 = tpu.matmul %71, %73, %cst_21 {dimension_numbers = #tpu.dot_dimension_numbers<[1], [0], [0], [1], [0, 0, 1, 1], [], []>} : vector<32x128xbf16>, vector<128x128xbf16>, vector<32x128xf32> -> vector<32x128xf32>
    %75 = arith.truncf %70 : vector<32x128xf32> to vector<32x128xbf16>
    %c0_22 = arith.constant 0 : index
    %c0_23 = arith.constant 0 : index
    %c0_24 = arith.constant 0 : index
    %76 = vector.load %arg7[%c0_22, %c0_23, %c0_24] : memref<3x128x128xbf16, #tpu.memory_space<vmem>>, vector<1x128x128xbf16>
    %77 = vector.shape_cast %76 : vector<1x128x128xbf16> to vector<128x128xbf16>
    %cst_25 = arith.constant dense<0.000000e+00> : vector<32x128xf32>
    %78 = tpu.matmul %75, %77, %cst_25 {dimension_numbers = #tpu.dot_dimension_numbers<[1], [0], [0], [1], [0, 0, 1, 1], [], []>} : vector<32x128xbf16>, vector<128x128xbf16>, vector<32x128xf32> -> vector<32x128xf32>
    %79 = arith.addf %74, %78 : vector<32x128xf32>
    %c0_26 = arith.constant 0 : index
    %c0_27 = arith.constant 0 : index
    %c0_28 = arith.constant 0 : index
    %80 = vector.load %arg8[%c0_26, %c0_27, %c0_28] : memref<3x1x128xf32, #tpu.memory_space<vmem>>, vector<1x1x128xf32>
    %81 = vector.shape_cast %80 : vector<1x1x128xf32> to vector<1x128xf32>
    %82 = vector.broadcast %81 : vector<1x128xf32> to vector<32x128xf32>
    %83 = arith.addf %79, %82 : vector<32x128xf32>
    %84 = arith.addf %63, %83 : vector<32x128xf32>
    %c14_i32 = arith.constant 14 : i32
    %85 = vector.broadcast %c14_i32 : i32 to vector<32x1xi32>
    %86 = arith.cmpi slt, %27, %85 : vector<32x1xi32>
    %87 = arith.extui %86 : vector<32x1xi1> to vector<32x1xi32>
    %88 = arith.sitofp %87 : vector<32x1xi32> to vector<32x1xf32>
    %c30_i32 = arith.constant 30 : i32
    %89 = tpu.dynamic_rotate %84 by %c30_i32 dim 0 : vector<32x128xf32>, i32 -> vector<32x128xf32>
    %90 = vector.broadcast %88 : vector<32x1xf32> to vector<32x128xf32>
    %91 = arith.mulf %89, %90 : vector<32x128xf32>
    %92 = arith.truncf %84 : vector<32x128xf32> to vector<32x128xbf16>
    %c1 = arith.constant 1 : index
    %c0_29 = arith.constant 0 : index
    %c0_30 = arith.constant 0 : index
    %93 = vector.load %arg6[%c1, %c0_29, %c0_30] : memref<3x128x128xbf16, #tpu.memory_space<vmem>>, vector<1x128x128xbf16>
    %94 = vector.shape_cast %93 : vector<1x128x128xbf16> to vector<128x128xbf16>
    %cst_31 = arith.constant dense<0.000000e+00> : vector<32x128xf32>
    %95 = tpu.matmul %92, %94, %cst_31 {dimension_numbers = #tpu.dot_dimension_numbers<[1], [0], [0], [1], [0, 0, 1, 1], [], []>} : vector<32x128xbf16>, vector<128x128xbf16>, vector<32x128xf32> -> vector<32x128xf32>
    %96 = arith.truncf %91 : vector<32x128xf32> to vector<32x128xbf16>
    %c1_32 = arith.constant 1 : index
    %c0_33 = arith.constant 0 : index
    %c0_34 = arith.constant 0 : index
    %97 = vector.load %arg7[%c1_32, %c0_33, %c0_34] : memref<3x128x128xbf16, #tpu.memory_space<vmem>>, vector<1x128x128xbf16>
    %98 = vector.shape_cast %97 : vector<1x128x128xbf16> to vector<128x128xbf16>
    %cst_35 = arith.constant dense<0.000000e+00> : vector<32x128xf32>
    %99 = tpu.matmul %96, %98, %cst_35 {dimension_numbers = #tpu.dot_dimension_numbers<[1], [0], [0], [1], [0, 0, 1, 1], [], []>} : vector<32x128xbf16>, vector<128x128xbf16>, vector<32x128xf32> -> vector<32x128xf32>
    %100 = arith.addf %95, %99 : vector<32x128xf32>
    %c1_36 = arith.constant 1 : index
    %c0_37 = arith.constant 0 : index
    %c0_38 = arith.constant 0 : index
    %101 = vector.load %arg8[%c1_36, %c0_37, %c0_38] : memref<3x1x128xf32, #tpu.memory_space<vmem>>, vector<1x1x128xf32>
    %102 = vector.shape_cast %101 : vector<1x1x128xf32> to vector<1x128xf32>
    %103 = vector.broadcast %102 : vector<1x128xf32> to vector<32x128xf32>
    %104 = arith.addf %100, %103 : vector<32x128xf32>
    %105 = arith.addf %84, %104 : vector<32x128xf32>
    %c12_i32 = arith.constant 12 : i32
    %106 = vector.broadcast %c12_i32 : i32 to vector<32x1xi32>
    %107 = arith.cmpi slt, %27, %106 : vector<32x1xi32>
    %108 = arith.extui %107 : vector<32x1xi1> to vector<32x1xi32>
    %109 = arith.sitofp %108 : vector<32x1xi32> to vector<32x1xf32>
    %c28_i32 = arith.constant 28 : i32
    %110 = tpu.dynamic_rotate %105 by %c28_i32 dim 0 : vector<32x128xf32>, i32 -> vector<32x128xf32>
    %111 = vector.broadcast %109 : vector<32x1xf32> to vector<32x128xf32>
    %112 = arith.mulf %110, %111 : vector<32x128xf32>
    %113 = arith.truncf %105 : vector<32x128xf32> to vector<32x128xbf16>
    %c2 = arith.constant 2 : index
    %c0_39 = arith.constant 0 : index
    %c0_40 = arith.constant 0 : index
    %114 = vector.load %arg6[%c2, %c0_39, %c0_40] : memref<3x128x128xbf16, #tpu.memory_space<vmem>>, vector<1x128x128xbf16>
    %115 = vector.shape_cast %114 : vector<1x128x128xbf16> to vector<128x128xbf16>
    %cst_41 = arith.constant dense<0.000000e+00> : vector<32x128xf32>
    %116 = tpu.matmul %113, %115, %cst_41 {dimension_numbers = #tpu.dot_dimension_numbers<[1], [0], [0], [1], [0, 0, 1, 1], [], []>} : vector<32x128xbf16>, vector<128x128xbf16>, vector<32x128xf32> -> vector<32x128xf32>
    %117 = arith.truncf %112 : vector<32x128xf32> to vector<32x128xbf16>
    %c2_42 = arith.constant 2 : index
    %c0_43 = arith.constant 0 : index
    %c0_44 = arith.constant 0 : index
    %118 = vector.load %arg7[%c2_42, %c0_43, %c0_44] : memref<3x128x128xbf16, #tpu.memory_space<vmem>>, vector<1x128x128xbf16>
    %119 = vector.shape_cast %118 : vector<1x128x128xbf16> to vector<128x128xbf16>
    %cst_45 = arith.constant dense<0.000000e+00> : vector<32x128xf32>
    %120 = tpu.matmul %117, %119, %cst_45 {dimension_numbers = #tpu.dot_dimension_numbers<[1], [0], [0], [1], [0, 0, 1, 1], [], []>} : vector<32x128xbf16>, vector<128x128xbf16>, vector<32x128xf32> -> vector<32x128xf32>
    %121 = arith.addf %116, %120 : vector<32x128xf32>
    %c2_46 = arith.constant 2 : index
    %c0_47 = arith.constant 0 : index
    %c0_48 = arith.constant 0 : index
    %122 = vector.load %arg8[%c2_46, %c0_47, %c0_48] : memref<3x1x128xf32, #tpu.memory_space<vmem>>, vector<1x1x128xf32>
    %123 = vector.shape_cast %122 : vector<1x1x128xf32> to vector<1x128xf32>
    %124 = vector.broadcast %123 : vector<1x128xf32> to vector<32x128xf32>
    %125 = arith.addf %121, %124 : vector<32x128xf32>
    %126 = arith.addf %105, %125 : vector<32x128xf32>
    %c0_49 = arith.constant 0 : index
    %c0_50 = arith.constant 0 : index
    %127 = vector.load %arg4[%c0_49, %c0_50] : memref<1x128xf32, #tpu.memory_space<vmem>>, vector<1x128xf32>
    %c0_51 = arith.constant 0 : index
    %c0_52 = arith.constant 0 : index
    %128 = vector.load %arg5[%c0_51, %c0_52] : memref<1x128xf32, #tpu.memory_space<vmem>>, vector<1x128xf32>
    %cst_53 = arith.constant dense<0.000000e+00> : vector<32xf32>
    %129 = vector.multi_reduction <add>, %126, %cst_53 [1] : vector<32x128xf32> to vector<32xf32>
    %130 = vector.shape_cast %129 : vector<32xf32> to vector<32x1xf32>
    %cst_54 = arith.constant 3.125000e-02 : f32
    %131 = vector.broadcast %cst_54 : f32 to vector<32x1xf32>
    %132 = arith.mulf %130, %131 : vector<32x1xf32>
    %133 = vector.broadcast %132 : vector<32x1xf32> to vector<32x128xf32>
    %134 = arith.subf %126, %133 : vector<32x128xf32>
    %135 = vector.broadcast %5 : vector<1x128xf32> to vector<32x128xf32>
    %136 = arith.mulf %134, %135 : vector<32x128xf32>
    %137 = arith.mulf %136, %136 : vector<32x128xf32>
    %cst_55 = arith.constant dense<0.000000e+00> : vector<32xf32>
    %138 = vector.multi_reduction <add>, %137, %cst_55 [1] : vector<32x128xf32> to vector<32xf32>
    %139 = vector.shape_cast %138 : vector<32xf32> to vector<32x1xf32>
    %cst_56 = arith.constant 3.125000e-02 : f32
    %140 = vector.broadcast %cst_56 : f32 to vector<32x1xf32>
    %141 = arith.mulf %139, %140 : vector<32x1xf32>
    %cst_57 = arith.constant 9.99999974E-6 : f32
    %142 = vector.broadcast %cst_57 : f32 to vector<32x1xf32>
    %143 = arith.addf %141, %142 : vector<32x1xf32>
    %144 = math.rsqrt %143 : vector<32x1xf32>
    %145 = vector.broadcast %144 : vector<32x1xf32> to vector<32x128xf32>
    %146 = arith.mulf %136, %145 : vector<32x128xf32>
    %147 = vector.broadcast %127 : vector<1x128xf32> to vector<32x128xf32>
    %148 = arith.mulf %146, %147 : vector<32x128xf32>
    %149 = vector.broadcast %128 : vector<1x128xf32> to vector<32x128xf32>
    %150 = arith.addf %148, %149 : vector<32x128xf32>
    %151 = arith.negf %150 : vector<32x128xf32>
    %152 = math.exp %151 : vector<32x128xf32>
    %cst_58 = arith.constant 1.000000e+00 : f32
    %153 = vector.broadcast %cst_58 : f32 to vector<32x128xf32>
    %154 = arith.addf %153, %152 : vector<32x128xf32>
    %155 = arith.divf %153, %154 : vector<32x128xf32>
    %156 = arith.mulf %150, %155 : vector<32x128xf32>
    %157 = arith.truncf %156 : vector<32x128xf32> to vector<32x128xbf16>
    %c0_59 = arith.constant 0 : index
    %c0_60 = arith.constant 0 : index
    %158 = vector.load %arg9[%c0_59, %c0_60] : memref<128x128xbf16, #tpu.memory_space<vmem>>, vector<128x128xbf16>
    %cst_61 = arith.constant dense<0.000000e+00> : vector<32x128xf32>
    %159 = tpu.matmul %157, %158, %cst_61 {dimension_numbers = #tpu.dot_dimension_numbers<[1], [0], [0], [1], [0, 0, 1, 1], [], []>} : vector<32x128xbf16>, vector<128x128xbf16>, vector<32x128xf32> -> vector<32x128xf32>
    %c0_62 = arith.constant 0 : index
    %c0_63 = arith.constant 0 : index
    %160 = vector.load %arg10[%c0_62, %c0_63] : memref<1x128xf32, #tpu.memory_space<vmem>>, vector<1x128xf32>
    %161 = vector.broadcast %160 : vector<1x128xf32> to vector<32x128xf32>
    %162 = arith.addf %159, %161 : vector<32x128xf32>
    %c0_64 = arith.constant 0 : index
    %c0_65 = arith.constant 0 : index
    %163 = vector.load %arg11[%c0_64, %c0_65] : memref<1x128xf32, #tpu.memory_space<vmem>>, vector<1x128xf32>
    %c0_66 = arith.constant 0 : index
    %c0_67 = arith.constant 0 : index
    %164 = vector.load %arg12[%c0_66, %c0_67] : memref<1x128xf32, #tpu.memory_space<vmem>>, vector<1x128xf32>
    %cst_68 = arith.constant dense<0.000000e+00> : vector<32xf32>
    %165 = vector.multi_reduction <add>, %162, %cst_68 [1] : vector<32x128xf32> to vector<32xf32>
    %166 = vector.shape_cast %165 : vector<32xf32> to vector<32x1xf32>
    %cst_69 = arith.constant 1.250000e-01 : f32
    %167 = vector.broadcast %cst_69 : f32 to vector<32x1xf32>
    %168 = arith.mulf %166, %167 : vector<32x1xf32>
    %169 = vector.broadcast %168 : vector<32x1xf32> to vector<32x128xf32>
    %170 = arith.subf %162, %169 : vector<32x128xf32>
    %171 = vector.broadcast %10 : vector<1x128xf32> to vector<32x128xf32>
    %172 = arith.mulf %170, %171 : vector<32x128xf32>
    %173 = arith.mulf %172, %172 : vector<32x128xf32>
    %cst_70 = arith.constant dense<0.000000e+00> : vector<32xf32>
    %174 = vector.multi_reduction <add>, %173, %cst_70 [1] : vector<32x128xf32> to vector<32xf32>
    %175 = vector.shape_cast %174 : vector<32xf32> to vector<32x1xf32>
    %cst_71 = arith.constant 1.250000e-01 : f32
    %176 = vector.broadcast %cst_71 : f32 to vector<32x1xf32>
    %177 = arith.mulf %175, %176 : vector<32x1xf32>
    %cst_72 = arith.constant 9.99999974E-6 : f32
    %178 = vector.broadcast %cst_72 : f32 to vector<32x1xf32>
    %179 = arith.addf %177, %178 : vector<32x1xf32>
    %180 = math.rsqrt %179 : vector<32x1xf32>
    %181 = vector.broadcast %180 : vector<32x1xf32> to vector<32x128xf32>
    %182 = arith.mulf %172, %181 : vector<32x128xf32>
    %183 = vector.broadcast %163 : vector<1x128xf32> to vector<32x128xf32>
    %184 = arith.mulf %182, %183 : vector<32x128xf32>
    %185 = vector.broadcast %164 : vector<1x128xf32> to vector<32x128xf32>
    %186 = arith.addf %184, %185 : vector<32x128xf32>
    %187 = arith.negf %186 : vector<32x128xf32>
    %188 = math.exp %187 : vector<32x128xf32>
    %cst_73 = arith.constant 1.000000e+00 : f32
    %189 = vector.broadcast %cst_73 : f32 to vector<32x128xf32>
    %190 = arith.addf %189, %188 : vector<32x128xf32>
    %191 = arith.divf %189, %190 : vector<32x128xf32>
    %192 = arith.mulf %186, %191 : vector<32x128xf32>
    %193 = arith.addf %0, %192 : vector<32x128xf32>
    %c0_74 = arith.constant 0 : index
    %c0_75 = arith.constant 0 : index
    %194 = vector.load %arg13[%c0_74, %c0_75] : memref<32x128xf32, #tpu.memory_space<vmem>>, vector<32x128xf32>
    tpu.vector_store %arg13[%c0_74, %c0_75], %193 {strides = array<i32>} : memref<32x128xf32, #tpu.memory_space<vmem>>, vector<32x128xf32>,
    return
  }
  func.func @transform_0(%arg0: i32) -> (i32, i32) {
    %c0_i32 = arith.constant 0 : i32
    %c0_i32_0 = arith.constant 0 : i32
    return %arg0, %c0_i32 : i32, i32
  }
  func.func @transform_1(%arg0: i32) -> (i32, i32) {
    %c0_i32 = arith.constant 0 : i32
    %c0_i32_0 = arith.constant 0 : i32
    %c0_i32_1 = arith.constant 0 : i32
    return %c0_i32, %c0_i32_0 : i32, i32
  }
  func.func @transform_2(%arg0: i32) -> (i32, i32) {
    %c0_i32 = arith.constant 0 : i32
    %c0_i32_0 = arith.constant 0 : i32
    %c0_i32_1 = arith.constant 0 : i32
    return %c0_i32, %c0_i32_0 : i32, i32
  }
  func.func @transform_3(%arg0: i32) -> (i32, i32) {
    %c0_i32 = arith.constant 0 : i32
    %c0_i32_0 = arith.constant 0 : i32
    %c0_i32_1 = arith.constant 0 : i32
    return %c0_i32, %c0_i32_0 : i32, i32
  }
  func.func @transform_4(%arg0: i32) -> (i32, i32) {
    %c0_i32 = arith.constant 0 : i32
    %c0_i32_0 = arith.constant 0 : i32
    %c0_i32_1 = arith.constant 0 : i32
    return %c0_i32, %c0_i32_0 : i32, i32
  }
  func.func @transform_5(%arg0: i32) -> (i32, i32, i32) {
    %c0_i32 = arith.constant 0 : i32
    %c0_i32_0 = arith.constant 0 : i32
    %c0_i32_1 = arith.constant 0 : i32
    %c0_i32_2 = arith.constant 0 : i32
    return %c0_i32, %c0_i32_0, %c0_i32_1 : i32, i32, i32
  }
  func.func @transform_6(%arg0: i32) -> (i32, i32, i32) {
    %c0_i32 = arith.constant 0 : i32
    %c0_i32_0 = arith.constant 0 : i32
    %c0_i32_1 = arith.constant 0 : i32
    %c0_i32_2 = arith.constant 0 : i32
    return %c0_i32, %c0_i32_0, %c0_i32_1 : i32, i32, i32
  }
  func.func @transform_7(%arg0: i32) -> (i32, i32, i32) {
    %c0_i32 = arith.constant 0 : i32
    %c0_i32_0 = arith.constant 0 : i32
    %c0_i32_1 = arith.constant 0 : i32
    %c0_i32_2 = arith.constant 0 : i32
    return %c0_i32, %c0_i32_0, %c0_i32_1 : i32, i32, i32
  }
  func.func @transform_8(%arg0: i32) -> (i32, i32) {
    %c0_i32 = arith.constant 0 : i32
    %c0_i32_0 = arith.constant 0 : i32
    %c0_i32_1 = arith.constant 0 : i32
    return %c0_i32, %c0_i32_0 : i32, i32
  }
  func.func @transform_9(%arg0: i32) -> (i32, i32) {
    %c0_i32 = arith.constant 0 : i32
    %c0_i32_0 = arith.constant 0 : i32
    %c0_i32_1 = arith.constant 0 : i32
    return %c0_i32, %c0_i32_0 : i32, i32
  }
  func.func @transform_10(%arg0: i32) -> (i32, i32) {
    %c0_i32 = arith.constant 0 : i32
    %c0_i32_0 = arith.constant 0 : i32
    %c0_i32_1 = arith.constant 0 : i32
    return %c0_i32, %c0_i32_0 : i32, i32
  }
  func.func @transform_11(%arg0: i32) -> (i32, i32) {
    %c0_i32 = arith.constant 0 : i32
    %c0_i32_0 = arith.constant 0 : i32
    %c0_i32_1 = arith.constant 0 : i32
    return %c0_i32, %c0_i32_0 : i32, i32
  }
  func.func @transform_12(%arg0: i32) -> (i32, i32) {
    %c0_i32 = arith.constant 0 : i32
    %c0_i32_0 = arith.constant 0 : i32
    return %arg0, %c0_i32 : i32, i32
  }
}

</mosaic_0001>

<bundles_post_ra>
// kernel: tpu_custom_call.1
= control target key start
LH: loop header
LB: loop body
LE: loop exit
PB: predicated region body
PF: predicated region fallthrough
CT: control target
= control target key end

     0   :  { %17 = vsyncpa [#allocation3], 0  ;;  %s2491_s0 = inlined_call_operand.hbm [shape: f32[32,128], index: 0, kind: input, shape index: {}, may-alias: {0,12}]   ;;  %s2492_s1 = inlined_call_operand.vmem [shape: bf16[128,128], index: 1, kind: input, shape index: {}]   ;;  %s2493_s2 = inlined_call_operand.vmem [shape: f32[1,128], index: 2, kind: input, shape index: {}]   ;;  %s2494_s3 = inlined_call_operand.vmem [shape: f32[1,128], index: 3, kind: input, shape index: {}]   ;;  %s2495_s4 = inlined_call_operand.vmem [shape: f32[1,128], index: 4, kind: input, shape index: {}]   ;;  %s2496_s5 = inlined_call_operand.hbm [shape: bf16[3,128,128], index: 5, kind: input, shape index: {}]   ;;  %s2497_s6 = inlined_call_operand.hbm [shape: bf16[3,128,128], index: 6, kind: input, shape index: {}]   ;;  %s2498_s7 = inlined_call_operand.vmem [shape: f32[3,1,128], index: 7, kind: input, shape index: {}]   ;;  %s2499_s8 = inlined_call_operand.hbm [shape: bf16[128,128], index: 8, kind: input, shape index: {}]   ;;  %s2500_s9 = inlined_call_operand.vmem [shape: f32[1,128], index: 9, kind: input, shape index: {}]   ;;  %s2501_s10 = inlined_call_operand.vmem [shape: f32[1,128], index: 10, kind: input, shape index: {}]   ;;  %s2502_s11 = inlined_call_operand.vmem [shape: f32[1,128], index: 11, kind: input, shape index: {}]   ;;  %s2503_s12 = inlined_call_operand.hbm [shape: f32[32,128], index: 12, kind: output, shape index: {}, may-alias: {0,12}]  }
   0x1   :  { %18 = vsyncpa [#allocation6], 0 }
   0x2   :  { %19 = vsyncpa [#allocation9], 0 }
   0x3   :  { %20 = vsyncpa [#allocation4], 0  ;;  %s2145_s21 = smov [#allocation5]   ;;  %s2027_s25 = scalar_lea.hbm %s2496_s5, 3072 }
   0x4   :  { %s46_s22 = sshll.u32 %s2145_s21, 4  ;;  %p2028_p0 = scmp.ne.s32.totalorder %s2496_s5, %s2027_s25  ;;  %s47_s22 = int_to_ptr.vmem [resolvable:$true] %s46_s22 }
   0x5   :  { %p2031_p1 = scmp.lt.u32.totalorder %s2027_s25, %s2496_s5 }
   0x7   :  { %p2033_p2 = pnand %p2031_p1, %p2028_p0 }
   0x9   :  { %2036 = shalt.err (!%p2033_p2)
}
   0xa   :  { %s2037_s30 = scalar_lea.vmem %s47_s22, 3072  ;;  %p2042_p4 = scmp.lt.s32.totalorder %s47_s22, %s47_s22 }
   0xb   :  { %p2038_p3 = scmp.ne.s32.totalorder %s47_s22, %s2037_s30  ;;  %p2043_p5 = scmp.lt.s32.totalorder %s2037_s30, %s2037_s30 }
   0xd   :  { %p2044_p6 = por %p2043_p5, %p2042_p4 }
   0xf   :  { %p2045_p7 = pnand %p2044_p6, %p2038_p3 }
  0x11   :  { %2048 = shalt.err (!%p2045_p7)
}
  0x12   :  { %s2146_s13 = smov 64   ;;  %s2147_s14 = smov 4  }
  0x13   :  { %52 = dma.hbm_to_vmem [thread:$0]  %s2496_s5, 3072, %s47_s22, [#allocation6], %s2146_s13, %s2146_s13, %s2147_s14  }
  0x14   :  { %s2148_s17 = smov [#allocation2]   ;;  %s2049_s21 = scalar_lea.hbm %s2491_s0, 512 }
  0x15   :  { %s26_s18 = sshll.u32 %s2148_s17, 4  ;;  %p2050_p8 = scmp.ne.s32.totalorder %s2491_s0, %s2049_s21  ;;  %s27_s18 = int_to_ptr.vmem [resolvable:$true] %s26_s18 }
  0x16   :  { %p2053_p9 = scmp.lt.u32.totalorder %s2049_s21, %s2491_s0 }
  0x18   :  { %p2055_p10 = pnand %p2053_p9, %p2050_p8 }
  0x1a   :  { %2058 = shalt.err (!%p2055_p10)
}
  0x1b   :  { %s2059_s27 = scalar_lea.vmem %s27_s18, 512  ;;  %p2064_p12 = scmp.lt.s32.totalorder %s27_s18, %s27_s18 }
  0x1c   :  { %p2060_p11 = scmp.ne.s32.totalorder %s27_s18, %s2059_s27  ;;  %p2065_p13 = scmp.lt.s32.totalorder %s2059_s27, %s2059_s27 }
  0x1e   :  { %p2066_p0 = por %p2065_p13, %p2064_p12 }
  0x20   :  { %p2067_p1 = pnand %p2066_p0, %p2060_p11 }
  0x22   :  { %2070 = shalt.err (!%p2067_p1)
}
  0x23   :  { %s2149_s5 = smov 128   ;;  %s2150_s22 = smov 8  }
  0x24   :  { %32 = dma.hbm_to_vmem [thread:$0]  %s2491_s0, 512, %s27_s18, [#allocation3], %s2149_s5, %s2149_s5, %s2150_s22  }
  0x25   :  { %s2151_s30 = smov [#allocation7]   ;;  %s2152_s16 = smov [#allocation8]  }
  0x26   :  { %s58_s15 = sshll.u32 %s2151_s30, 4  ;;  %s72_s17 = sshll.u32 %s2152_s16, 4  ;;  %s59_s15 = int_to_ptr.vmem [resolvable:$true] %s58_s15  ;;  %s2250_s17 = int_to_ptr.vmem [resolvable:$true] %s72_s17 }
  0x27   :  { %s2071_s21 = scalar_lea.hbm %s2497_s6, 3072 }
  0x28   :  { %p2072_p2 = scmp.ne.s32.totalorder %s2497_s6, %s2071_s21  ;;  %p2075_p3 = scmp.lt.u32.totalorder %s2071_s21, %s2497_s6 }
  0x2a   :  { %p2077_p4 = pnand %p2075_p3, %p2072_p2 }
  0x2c   :  { %2080 = shalt.err (!%p2077_p4)
}
  0x2d   :  { %s2081_s0 = scalar_lea.vmem %s59_s15, 3072  ;;  %p2086_p6 = scmp.lt.s32.totalorder %s59_s15, %s59_s15 }
  0x2e   :  { %p2082_p5 = scmp.ne.s32.totalorder %s59_s15, %s2081_s0  ;;  %p2087_p7 = scmp.lt.s32.totalorder %s2081_s0, %s2081_s0 }
  0x30   :  { %p2088_p8 = por %p2087_p7, %p2086_p6 }
  0x32   :  { %p2089_p9 = pnand %p2088_p8, %p2082_p5 }
  0x34   :  { %2092 = shalt.err (!%p2089_p9)
}
  0x35   :  { %64 = dma.hbm_to_vmem [thread:$0]  %s2497_s6, 3072, %s59_s15, [#allocation6], %s2146_s13, %s2146_s13, %s2147_s14  }
  0x36   :  { %s2093_s30 = scalar_lea.hbm %s2499_s8, 1024 }
  0x37   :  { %p2094_p10 = scmp.ne.s32.totalorder %s2499_s8, %s2093_s30  ;;  %p2097_p11 = scmp.lt.u32.totalorder %s2093_s30, %s2499_s8 }
  0x39   :  { %p2099_p12 = pnand %p2097_p11, %p2094_p10 }
  0x3b   :  { %2102 = shalt.err (!%p2099_p12)
}
  0x3c   :  { %s2103_s23 = scalar_lea.vmem %s2250_s17, 1024  ;;  %p2108_p0 = scmp.lt.s32.totalorder %s2250_s17, %s2250_s17 }
  0x3d   :  { %p2104_p13 = scmp.ne.s32.totalorder %s2250_s17, %s2103_s23  ;;  %p2109_p1 = scmp.lt.s32.totalorder %s2103_s23, %s2103_s23 }
  0x3f   :  { %p2110_p2 = por %p2109_p1, %p2108_p0 }
  0x41   :  { %p2111_p3 = pnand %p2110_p2, %p2104_p13 }
  0x43   :  { %2114 = shalt.err (!%p2111_p3)
}
  0x44   :  { %78 = dma.hbm_to_vmem [thread:$0]  %s2499_s8, 1024, %s2250_s17, [#allocation9], %s2146_s13, %s2146_s13, %s2147_s14  }
  0x45   :  { %2137 = dma.done.wait [#allocation3], 512  }
  0x46   :  { %2138 = vsyncadd [#allocation3], 4294966784 }
  0x47   :  { %2139 = dma.done.wait [#allocation6], 6144  }
  0x48   :  { %2140 = vsyncadd [#allocation6], 4294961152 }
  0x49   :  { %2141 = dma.done.wait [#allocation9], 1024  }
  0x4a   :  { %2142 = vsyncadd [#allocation9], 4294966272  ;;  %v1887_v0 = vld [vmem:[%s2492_s1] sm:$0xff]   ;;  %v1888_v1 = vld [vmem:[%s2492_s1 + $0x8] sm:$0xff]   ;;  %v102_v23 = vlaneseq  ;;  %v2153_v34 = vmov 0.0  }
  0x4b   :  { %1705 = vmatprep.subr.bf16.mxu0 %v1887_v0  ;;  %v1889_v2 = vld [vmem:[%s2492_s1 + $0x10] sm:$0xff]   ;;  %v1890_v3 = vld [vmem:[%s2492_s1 + $0x18] sm:$0xff]   ;;  %v98_v4 = vld [vmem:[#allocation2] sm:$0xff] }
  0x4c   :  { %1706 = vmatpush3.bf16.msra.mxu0 %v1887_v0  ;;  %v99_v5 = vld [vmem:[#allocation2 + $0x8] sm:$0xff]  ;;  %v1891_v7 = vld [vmem:[%s2492_s1 + $0x20] sm:$0xff]   ;;  %v1893_v9 = vld [vmem:[%s2492_s1 + $0x30] sm:$0xff]   ;;  %v2315_v24 = vand.u32 127, %v102_v23 }
  0x4d   :  { %1707 = vmatprep.subr.bf16.mxu0 %v1888_v1  ;;  %v163_v6 = vpack.c.bf16 %v99_v5, %v98_v4  ;;  %v1892_v8 = vld [vmem:[%s2492_s1 + $0x28] sm:$0xff]   ;;  %v1894_v10 = vld [vmem:[%s2492_s1 + $0x38] sm:$0xff]   ;;  %v100_v11 = vld [vmem:[#allocation2 + $0x10] sm:$0xff] }
  0x4e   :  { %v101_v12 = vld [vmem:[#allocation2 + $0x18] sm:$0xff]  ;;  %v1532_v14 = vld [vmem:[%s2493_s2] ss:$0 sm:$0xff]  ;;  %vm104_vm0 = vcmp.lt.s32.totalorder %v2315_v24, 32  ;;  %v1896_v48 = vld [vmem:[#allocation7 + $0x8] sm:$0xff]   ;;  %vm107_vm10 = vcmp.lt.s32.totalorder %v2315_v24, 8 }
  0x4f   :  { %1721 = vmatprep.mubr.bf16.mxu0 %v163_v6  ;;  %v164_v13 = vpack.c.bf16 %v101_v12, %v100_v11  ;;  %v2319_v35 = vsel %vm104_vm0, 1.0, %v2153_v34  ;;  %v1895_v47 = vld [vmem:[#allocation7] sm:$0xff]   ;;  %v1897_v49 = vld [vmem:[#allocation7 + $0x10] sm:$0xff]   ;;  %v1898_v50 = vld [vmem:[#allocation7 + $0x18] sm:$0xff]  }
  0x50   :  { %1708 = vmatpush3.bf16.msra.mxu0 %v1888_v1  ;;  %1725 = vmatprep.subr.bf16.mxu1 %v1895_v47  ;;  %v1899_v51 = vld [vmem:[#allocation7 + $0x20] sm:$0xff]   ;;  %v1900_v52 = vld [vmem:[#allocation7 + $0x28] sm:$0xff]   ;;  %v1901_v53 = vld [vmem:[#allocation7 + $0x30] sm:$0xff]  }
  0x51   :  { %1709 = vmatprep.subr.bf16.mxu0 %v1889_v2  ;;  %1726 = vmatpush3.bf16.msra.mxu1 %v1895_v47  ;;  %v1902_v54 = vld [vmem:[#allocation7 + $0x38] sm:$0xff]   ;;  %v2341_v55 = vld [vmem:[#allocation5] sm:$0xff]   ;;  %v1912_v57 = vld [vmem:[#allocation7 + $0x48] sm:$0xff]  }
  0x52   :  { %1727 = vmatprep.subr.bf16.mxu1 %v1896_v48  ;;  %v1911_v56 = vld [vmem:[#allocation7 + $0x40] sm:$0xff]   ;;  %v1913_v58 = vld [vmem:[#allocation7 + $0x50] sm:$0xff]   ;;  %v1914_v59 = vld [vmem:[#allocation7 + $0x58] sm:$0xff]  }
  0x53   :  { %v1915_v60 = vld [vmem:[#allocation7 + $0x60] sm:$0xff]  }
  0x54   :  { %1710 = vmatpush3.bf16.msra.mxu0 %v1889_v2  ;;  %v2353_v12 = vld [vmem:[%s2495_s4] ss:$0 sm:$0xff] }
  0x55   :  { %1711 = vmatprep.subr.bf16.mxu0 %v1890_v3  ;;  %1728 = vmatpush3.bf16.msra.mxu1 %v1896_v48 }
  0x56   :  { %1729 = vmatprep.subr.bf16.mxu1 %v1897_v49 }
  0x58   :  { %1712 = vmatpush3.bf16.msra.mxu0 %v1890_v3 }
  0x59   :  { %1713 = vmatprep.subr.bf16.mxu0 %v1891_v7  ;;  %1730 = vmatpush3.bf16.msra.mxu1 %v1897_v49 }
  0x5a   :  { %1731 = vmatprep.subr.bf16.mxu1 %v1898_v50 }
  0x5c   :  { %1714 = vmatpush3.bf16.msra.mxu0 %v1891_v7 }
  0x5d   :  { %1715 = vmatprep.subr.bf16.mxu0 %v1892_v8  ;;  %1732 = vmatpush3.bf16.msra.mxu1 %v1898_v50 }
  0x5e   :  { %1733 = vmatprep.subr.bf16.mxu1 %v1899_v51 }
  0x60   :  { %1716 = vmatpush3.bf16.msra.mxu0 %v1892_v8 }
  0x61   :  { %1717 = vmatprep.subr.bf16.mxu0 %v1893_v9  ;;  %1734 = vmatpush3.bf16.msra.mxu1 %v1899_v51 }
  0x62   :  { %1735 = vmatprep.subr.bf16.mxu1 %v1900_v52 }
  0x64   :  { %1718 = vmatpush3.bf16.msra.mxu0 %v1893_v9 }
  0x65   :  { %1719 = vmatprep.subr.bf16.mxu0 %v1894_v10  ;;  %1736 = vmatpush3.bf16.msra.mxu1 %v1900_v52 }
  0x66   :  { %1737 = vmatprep.subr.bf16.mxu1 %v1901_v53 }
  0x68   :  { %1720 = vmatpush3.bf16.msra.mxu0 %v1894_v10  ;;  %v2347_v10 = vld [vmem:[%s2494_s3] ss:$0 sm:$0xff] }
  0x69   :  { %1738 = vmatpush3.bf16.msra.mxu1 %v1901_v53  ;;  %1765 = vmatprep.subr.bf16.mxu0 %v1911_v56 }
  0x6a   :  { %1739 = vmatprep.subr.bf16.mxu1 %v1902_v54 }
  0x6b   :  { %1722 = vmatmul.mubr.bf16.vlgmr.msra.gmra.mrb[0].mxu0 %v164_v13 }
  0x6c   :  { %1766 = vmatpush3.bf16.msra.mxu0 %v1911_v56 }
  0x6d   :  { %1740 = vmatpush3.bf16.msra.mxu1 %v1902_v54  ;;  %1767 = vmatprep.subr.bf16.mxu0 %v1912_v57 }
  0x6e   :  { %1745 = vmatprep.subr.bf16.mxu1 %v2341_v55 }
  0x70   :  { %1768 = vmatpush3.bf16.msra.mxu0 %v1912_v57 }
  0x71   :  { %1769 = vmatprep.subr.bf16.mxu0 %v1913_v58 }
  0x74   :  { %1770 = vmatpush3.bf16.msra.mxu0 %v1913_v58 }
  0x75   :  { %1771 = vmatprep.subr.bf16.mxu0 %v1914_v59 }
  0x78   :  { %1772 = vmatpush3.bf16.msra.mxu0 %v1914_v59 }
  0x79   :  { %1773 = vmatprep.subr.bf16.mxu0 %v1915_v60 }
  0x7c   :  { %1774 = vmatpush3.bf16.msra.mxu0 %v1915_v60 }
 0x13e   :  { %v1723_v15 = vpop.f32.mrb[0].mxu0 }
 0x13f   :  { %v270_v16 = vpop.f32.mrb[1].mxu0  ;;  %v279_v22 = vadd.f32 %v1723_v15, %v1532_v14 }
 0x140   :  { %v271_v17 = vadd.f32 %v1532_v14, %v270_v16  ;;  %v1724_v18 = vpop.f32.mrb[2].mxu0 }
 0x141   :  { %v273_v19 = vpop.f32.mrb[3].mxu0  ;;  %v282_v21 = vadd.f32 %v1724_v18, %v1532_v14 }
 0x142   :  { %v274_v20 = vadd.f32 %v1532_v14, %v273_v19  ;;  %287 = vadd.xlane.f32.xlu1 %v271_v17 }
 0x144   :  { %289 = vadd.xlane.f32.xlu0 %v274_v20 }
 0x146   :  { %293 = vadd.xlane.f32.xlu1 %v282_v21 }
 0x148   :  { %291 = vadd.xlane.f32.xlu0 %v279_v22 }
 0x1cf   :  { %v288_v25 = vpop.xlane.xlu1 %287 }
 0x1d0   :  { %v295_v26 = vmul.f32 0.03125, %v288_v25 }
 0x1d1   :  { %v290_v27 = vpop.xlane.xlu0 %289 }
 0x1d2   :  { %v296_v28 = vmul.f32 0.03125, %v290_v27  ;;  %v299_v30 = vsub.f32 %v271_v17, %v295_v26 }
 0x1d3   :  { %v294_v29 = vpop.xlane.xlu1 %293 }
 0x1d4   :  { %v300_v31 = vsub.f32 %v274_v20, %v296_v28  ;;  %v298_v32 = vmul.f32 0.03125, %v294_v29  ;;  %v2327_v41 = vmul.f32 %v2319_v35, %v299_v30 }
 0x1d5   :  { %v292_v33 = vpop.xlane.xlu0 %291 }
 0x1d6   :  { %v297_v36 = vmul.f32 0.03125, %v292_v33  ;;  %v2322_v37 = vmul.f32 %v2319_v35, %v300_v31  ;;  %v302_v38 = vsub.f32 %v282_v21, %v298_v32  ;;  %v307_v44 = vmul.f32 %v2327_v41, %v2327_v41 }
 0x1d8   :  { %v301_v39 = vsub.f32 %v279_v22, %v297_v36  ;;  %v308_v40 = vmul.f32 %v2322_v37, %v2322_v37  ;;  %v2337_v45 = vmul.f32 %v2319_v35, %v302_v38 }
 0x1da   :  { %313 = vadd.xlane.f32.xlu0 %v308_v40  ;;  %v2330_v42 = vmul.f32 %v2319_v35, %v301_v39  ;;  %v310_v46 = vmul.f32 %v2337_v45, %v2337_v45  ;;  %v2367_v39 = vshrl.u32 %v102_v23, 7 }
 0x1dc   :  { %v309_v43 = vmul.f32 %v2330_v42, %v2330_v42  ;;  %vm399_vm2 = vcmp.lt.s32.totalorder %v2367_v39, 7  ;;  %vm669_vm6 = vcmp.lt.s32.totalorder %v2367_v39, 6  ;;  %vm942_vm9 = vcmp.lt.s32.totalorder %v2367_v39, 4 }
 0x1de   :  { %315 = vadd.xlane.f32.xlu1 %v309_v43  ;;  %311 = vadd.xlane.f32.xlu0 %v307_v44  ;;  %v112_v43 = vadd.s32 8, %v2367_v39 }
 0x1e2   :  { %317 = vadd.xlane.f32.xlu1 %v310_v46  ;;  %v114_v46 = vadd.s32 24, %v2367_v39  ;;  %v1937_v39 = vld [vmem:[#allocation5 + $0x90] sm:$0xff]  }
 0x1e4   :  { %v2376_v23 = vand.u32 15, %v114_v46 }
 0x1e6   :  { %vm386_vm3 = vcmp.lt.s32.totalorder %v2376_v23, 15  ;;  %vm656_vm4 = vcmp.lt.s32.totalorder %v2376_v23, 14  ;;  %vm929_vm7 = vcmp.lt.s32.totalorder %v2376_v23, 12 }
 0x1e7   :  { %v1567_v46 = vsel %vm656_vm4, 1.0, %v2153_v34 }
 0x267   :  { %v314_v61 = vpop.xlane.xlu0 %313 }
 0x268   :  { %v320_v62 = vmul.f32 0.03125, %v314_v61 }
 0x26a   :  { %v324_v63 = vadd.f32 1e-05, %v320_v62  ;;  %v1548_v62 = vsel %vm386_vm3, 1.0, %v2153_v34 }
 0x26b   :  { %v312_v0 = vpop.xlane.xlu0 %311  ;;  %v316_v1 = vpop.xlane.xlu1 %315 }
 0x26c   :  { %1951 = vrsqrt.f32 %v324_v63  ;;  %v319_v2 = vmul.f32 0.03125, %v312_v0  ;;  %v321_v3 = vmul.f32 0.03125, %v316_v1 }
 0x26e   :  { %v323_v4 = vadd.f32 1e-05, %v319_v2  ;;  %v325_v5 = vadd.f32 1e-05, %v321_v3 }
 0x26f   :  { %v318_v6 = vpop.xlane.xlu1 %317 }
 0x270   :  { %1953 = vrsqrt.f32 %v323_v4  ;;  %v322_v7 = vmul.f32 0.03125, %v318_v6  ;;  %v1904_v6 = vld [vmem:[#allocation5 + $0x8] sm:$0xff]  }
 0x271   :  { %1955 = vrsqrt.f32 %v325_v5 }
 0x272   :  { %v326_v8 = vadd.f32 1e-05, %v322_v7 }
 0x274   :  { %1957 = vrsqrt.f32 %v326_v8  ;;  %v1905_v8 = vld [vmem:[#allocation5 + $0x10] sm:$0xff]  }
 0x276   :  { %v1952_v9 = vpop.eup %1951 }
 0x277   :  { %v332_v11 = vmul.f32 %v1952_v9, %v2322_v37  ;;  %v1906_v9 = vld [vmem:[#allocation5 + $0x18] sm:$0xff]  }
 0x279   :  { %v342_v13 = vmul.f32 %v2347_v10, %v332_v11  ;;  %v1907_v11 = vld [vmem:[#allocation5 + $0x20] sm:$0xff]  }
 0x27a   :  { %v1954_v14 = vpop.eup %1953 }
 0x27b   :  { %v1956_v15 = vpop.eup %1955  ;;  %v331_v16 = vmul.f32 %v1954_v14, %v2327_v41  ;;  %v352_v17 = vadd.f32 %v2353_v12, %v342_v13  ;;  %v1908_v13 = vld [vmem:[#allocation5 + $0x28] sm:$0xff]   ;;  %v1909_v14 = vld [vmem:[#allocation5 + $0x30] sm:$0xff]  }
 0x27c   :  { %v333_v18 = vmul.f32 %v1956_v15, %v2330_v42  ;;  %v1910_v15 = vld [vmem:[#allocation5 + $0x38] sm:$0xff]  }
 0x27d   :  { %v341_v19 = vmul.f32 %v2347_v10, %v331_v16  ;;  %v1544_v20 = vmul.f32 -1.442695, %v352_v17  ;;  %v1916_v16 = vld [vmem:[#allocation7 + $0x68] sm:$0xff]  }
 0x27e   :  { %v1958_v21 = vpop.eup %1957  ;;  %v343_v22 = vmul.f32 %v2347_v10, %v333_v18  ;;  %1775 = vmatprep.subr.bf16.mxu0 %v1916_v16  ;;  %v1918_v18 = vld [vmem:[#allocation7 + $0x78] sm:$0xff]  }
 0x27f   :  { %v334_v25 = vmul.f32 %v1958_v21, %v2337_v45  ;;  %v351_v26 = vadd.f32 %v2353_v12, %v341_v19  ;;  %1959 = vpow2.f32 %v1544_v20  ;;  %v2370_v45 = vand.u32 15, %v112_v43  ;;  %1776 = vmatpush3.bf16.msra.mxu0 %v1916_v16  ;;  %v1919_v19 = vld [vmem:[#allocation5 + $0x40] sm:$0xff]   ;;  %v1928_v21 = vld [vmem:[#allocation7 + $0x88] sm:$0xff]  }
 0x280   :  { %v353_v27 = vadd.f32 %v2353_v12, %v343_v22  ;;  %v1927_v20 = vld [vmem:[#allocation7 + $0x80] sm:$0xff]   ;;  %v1929_v22 = vld [vmem:[#allocation7 + $0x90] sm:$0xff]  }
 0x281   :  { %v344_v28 = vmul.f32 %v2347_v10, %v334_v25  ;;  %v1543_v29 = vmul.f32 -1.442695, %v351_v26  ;;  %vm384_vm1 = vcmp.lt.s32.totalorder %v2370_v45, 15  ;;  %v1930_v25 = vld [vmem:[#allocation7 + $0x98] sm:$0xff]   ;;  %vm654_vm5 = vcmp.lt.s32.totalorder %v2370_v45, 14 }
 0x282   :  { %v1545_v30 = vmul.f32 -1.442695, %v353_v27  ;;  %v1547_v53 = vsel %vm384_vm1, 1.0, %v2153_v34  ;;  %vm927_vm8 = vcmp.lt.s32.totalorder %v2370_v45, 12 }
 0x283   :  { %1961 = vpow2.f32 %v1543_v29  ;;  %v354_v31 = vadd.f32 %v2353_v12, %v344_v28 }
 0x284   :  { %1963 = vpow2.f32 %v1545_v30 }
 0x285   :  { %v1546_v32 = vmul.f32 -1.442695, %v354_v31 }
 0x287   :  { %1965 = vpow2.f32 %v1546_v32 }
 0x289   :  { %v1960_v33 = vpop.eup %1959 }
 0x28a   :  { %v368_v36 = vadd.f32 1.0, %v1960_v33 }
 0x28c   :  { %1967 = vrcp.f32 %v368_v36 }
 0x28d   :  { %v1962_v37 = vpop.eup %1961 }
 0x28e   :  { %v1964_v38 = vpop.eup %1963  ;;  %v367_v40 = vadd.f32 1.0, %v1962_v37 }
 0x28f   :  { %v369_v41 = vadd.f32 1.0, %v1964_v38 }
 0x290   :  { %1969 = vrcp.f32 %v367_v40 }
 0x291   :  { %v1966_v42 = vpop.eup %1965  ;;  %1971 = vrcp.f32 %v369_v41 }
 0x292   :  { %v370_v44 = vadd.f32 1.0, %v1966_v42 }
 0x294   :  { %1973 = vrcp.f32 %v370_v44 }
 0x296   :  { %v1968_v47 = vpop.eup %1967 }
 0x297   :  { %v2373_v49 = vmul.f32 %v1968_v47, %v352_v17  ;;  %v1917_v17 = vld [vmem:[#allocation7 + $0x70] sm:$0xff]  }
 0x298   :  { %1777 = vmatprep.subr.bf16.mxu0 %v1917_v17 }
 0x299   :  { %v396_v57 = vrot.slane %v2373_v49, 1  ;;  %1778 = vmatpush3.bf16.msra.mxu0 %v1917_v17 }
 0x29a   :  { %v1970_v48 = vpop.eup %1969  ;;  %1779 = vmatprep.subr.bf16.mxu0 %v1918_v18 }
 0x29b   :  { %v1972_v50 = vpop.eup %1971  ;;  %v2378_v51 = vmul.f32 %v1970_v48, %v351_v26  ;;  %v1931_v26 = vld [vmem:[#allocation7 + $0xa0] sm:$0xff]  }
 0x29c   :  { %v2380_v52 = vmul.f32 %v1972_v50, %v353_v27  ;;  %v1565_v27 = vld [vmem:[%s2498_s7] ss:$0 sm:$0xff]  ;;  %v1566_v50 = vsel %vm654_vm5, 1.0, %v2153_v34 }
 0x29d   :  { %v395_v56 = vrot.slane %v2378_v51, 1  ;;  %v408_v7 = vpack.c.bf16 %v2373_v49, %v2378_v51  ;;  %1780 = vmatpush3.bf16.msra.mxu0 %v1918_v18 }
 0x29e   :  { %v1974_v54 = vpop.eup %1973  ;;  %v397_v58 = vrot.slane %v2380_v52, 1  ;;  %1785 = vmatprep.subr.bf16.mxu0 %v1919_v19 }
 0x29f   :  { %v2388_v59 = vmul.f32 %v1974_v54, %v354_v31  ;;  %v402_v0 = vsel %vm399_vm2, %v395_v56, %v396_v57 }
 0x2a0   :  { %v401_v60 = vsel %vm399_vm2, %v396_v57, %v397_v58 }
 0x2a1   :  { %v405_v61 = vmul.f32 %v1547_v53, %v401_v60  ;;  %v398_v63 = vrot.slane %v2388_v59, 1 }
 0x2a3   :  { %v426_v1 = vpack.c.bf16 %v405_v61, %v402_v0  ;;  %v403_v2 = vsel %vm399_vm2, %v398_v63, %v395_v56  ;;  %v400_v4 = vsel %vm399_vm2, %v397_v58, %v398_v63  ;;  %v1921_v61 = vld [vmem:[#allocation5 + $0x50] sm:$0xff]   ;;  %v1923_v63 = vld [vmem:[#allocation5 + $0x60] sm:$0xff]   ;;  %v1924_v0 = vld [vmem:[#allocation5 + $0x68] sm:$0xff]  }
 0x2a4   :  { %v407_v3 = vmul.f32 %v1548_v62, %v403_v2  ;;  %v1922_v62 = vld [vmem:[#allocation5 + $0x58] sm:$0xff]  }
 0x2a5   :  { %1741 = vmatprep.mubr.bf16.mxu1 %v426_v1  ;;  %v1925_v1 = vld [vmem:[#allocation5 + $0x70] sm:$0xff]   ;;  %v1926_v2 = vld [vmem:[#allocation5 + $0x78] sm:$0xff]  }
 0x2a6   :  { %v427_v5 = vpack.c.bf16 %v407_v3, %v400_v4  ;;  %v1932_v4 = vld [vmem:[#allocation7 + $0xa8] sm:$0xff]  }
 0x2a8   :  { %1742 = vmatmul.mubr.bf16.vlgmr.msra.gmra.mrb[0].mxu1 %v427_v5  ;;  %v1933_v5 = vld [vmem:[#allocation7 + $0xb0] sm:$0xff]  }
 0x2a9   :  { %1746 = vmatpush3.bf16.msra.mxu1 %v2341_v55  ;;  %1761 = vmatprep.mubr.bf16.mxu1 %v408_v7  ;;  %v409_v55 = vpack.c.bf16 %v2388_v59, %v2380_v52  ;;  %v1935_v7 = vld [vmem:[#allocation5 + $0x80] sm:$0xff]  }
 0x2aa   :  { %1747 = vmatprep.subr.bf16.mxu1 %v1904_v6 }
 0x2ad   :  { %1748 = vmatpush3.bf16.msra.mxu1 %v1904_v6  ;;  %v1934_v6 = vld [vmem:[#allocation7 + $0xb8] sm:$0xff]  }
 0x2ae   :  { %1749 = vmatprep.subr.bf16.mxu1 %v1905_v8 }
 0x2b1   :  { %1750 = vmatpush3.bf16.msra.mxu1 %v1905_v8  ;;  %v1585_v8 = vld [vmem:[%s2498_s7 + $0x1] ss:$0 sm:$0xff] }
 0x2b2   :  { %1751 = vmatprep.subr.bf16.mxu1 %v1906_v9 }
 0x2b5   :  { %1752 = vmatpush3.bf16.msra.mxu1 %v1906_v9 }
 0x2b6   :  { %1753 = vmatprep.subr.bf16.mxu1 %v1907_v11 }
 0x2b9   :  { %1754 = vmatpush3.bf16.msra.mxu1 %v1907_v11 }
 0x2ba   :  { %1755 = vmatprep.subr.bf16.mxu1 %v1908_v13 }
 0x2bd   :  { %1756 = vmatpush3.bf16.msra.mxu1 %v1908_v13 }
 0x2be   :  { %1757 = vmatprep.subr.bf16.mxu1 %v1909_v14 }
 0x2c1   :  { %1758 = vmatpush3.bf16.msra.mxu1 %v1909_v14 }
 0x2c2   :  { %1759 = vmatprep.subr.bf16.mxu1 %v1910_v15 }
 0x2c5   :  { %1760 = vmatpush3.bf16.msra.mxu1 %v1910_v15 }
 0x2c6   :  { %1805 = vmatprep.subr.bf16.mxu1 %v1927_v20 }
 0x2c8   :  { %1762 = vmatmul.mubr.bf16.vlgmr.msra.gmra.mrb[0].mxu1 %v409_v55 }
 0x2c9   :  { %1806 = vmatpush3.bf16.msra.mxu1 %v1927_v20 }
 0x2ca   :  { %1807 = vmatprep.subr.bf16.mxu1 %v1928_v21 }
 0x2cd   :  { %1808 = vmatpush3.bf16.msra.mxu1 %v1928_v21 }
 0x2ce   :  { %1809 = vmatprep.subr.bf16.mxu1 %v1929_v22 }
 0x2d1   :  { %1810 = vmatpush3.bf16.msra.mxu1 %v1929_v22 }
 0x2d2   :  { %1811 = vmatprep.subr.bf16.mxu1 %v1930_v25 }
 0x2d5   :  { %1812 = vmatpush3.bf16.msra.mxu1 %v1930_v25 }
 0x2d6   :  { %1813 = vmatprep.subr.bf16.mxu1 %v1931_v26 }
 0x2d9   :  { %1814 = vmatpush3.bf16.msra.mxu1 %v1931_v26  ;;  %v1587_v26 = vsel %vm929_vm7, 1.0, %v2153_v34 }
 0x2da   :  { %1815 = vmatprep.subr.bf16.mxu1 %v1932_v4 }
 0x2dd   :  { %1816 = vmatpush3.bf16.msra.mxu1 %v1932_v4 }
 0x2de   :  { %1817 = vmatprep.subr.bf16.mxu1 %v1933_v5 }
 0x2e1   :  { %1818 = vmatpush3.bf16.msra.mxu1 %v1933_v5 }
 0x2e2   :  { %1819 = vmatprep.subr.bf16.mxu1 %v1934_v6 }
 0x2e5   :  { %1820 = vmatpush3.bf16.msra.mxu1 %v1934_v6 }
 0x2e6   :  { %1825 = vmatprep.subr.bf16.mxu1 %v1935_v7 }
 0x39b   :  { %v1763_v28 = vpop.f32.mrb[0].mxu1 }
 0x39c   :  { %v647_v29 = vadd.f32 %v1763_v28, %v1565_v27  ;;  %v623_v30 = vpop.f32.mrb[1].mxu1 }
 0x39d   :  { %v645_v31 = vadd.f32 %v1565_v27, %v623_v30  ;;  %v1764_v32 = vpop.f32.mrb[2].mxu1 }
 0x39e   :  { %v648_v33 = vadd.f32 %v1764_v32, %v1565_v27  ;;  %v626_v36 = vpop.f32.mrb[3].mxu1  ;;  %v2409_v37 = vadd.f32 %v647_v29, %v2380_v52  ;;  %v1586_v29 = vsel %vm927_vm8, 1.0, %v2153_v34 }
 0x39f   :  { %v2412_v38 = vadd.f32 %v645_v31, %v2378_v51  ;;  %v646_v40 = vadd.f32 %v1565_v27, %v626_v36 }
 0x3a0   :  { %v2416_v41 = vadd.f32 %v648_v33, %v2388_v59  ;;  %v667_v47 = vrot.slane %v2409_v37, 2  ;;  %v1920_v59 = vld [vmem:[#allocation5 + $0x48] sm:$0xff]  }
 0x3a1   :  { %v665_v42 = vrot.slane %v2412_v38, 2  ;;  %v2421_v43 = vadd.f32 %v646_v40, %v2373_v49 }
 0x3a2   :  { %v668_v44 = vrot.slane %v2416_v41, 2  ;;  %v679_v3 = vpack.c.bf16 %v2416_v41, %v2409_v37 }
 0x3a3   :  { %v666_v48 = vrot.slane %v2421_v43, 2  ;;  %v678_v60 = vpack.c.bf16 %v2421_v43, %v2412_v38 }
 0x3a4   :  { %v673_v51 = vsel %vm669_vm6, %v668_v44, %v665_v42  ;;  %v670_v49 = vsel %vm669_vm6, %v667_v47, %v668_v44  ;;  %v1941_v44 = vld [vmem:[#allocation5 + $0xb0] sm:$0xff]  }
 0x3a5   :  { %v671_v52 = vsel %vm669_vm6, %v666_v48, %v667_v47  ;;  %v677_v53 = vmul.f32 %v1567_v46, %v673_v51  ;;  %v672_v56 = vsel %vm669_vm6, %v665_v42, %v666_v48  ;;  %v1939_v42 = vld [vmem:[#allocation5 + $0xa0] sm:$0xff]   ;;  %v1942_v46 = vld [vmem:[#allocation5 + $0xb8] sm:$0xff]  }
 0x3a6   :  { %v675_v54 = vmul.f32 %v1566_v50, %v671_v52  ;;  %v1605_v48 = vld [vmem:[%s2498_s7 + $0x2] ss:$0 sm:$0xff] }
 0x3a7   :  { %v698_v58 = vpack.c.bf16 %v677_v53, %v670_v49 }
 0x3a8   :  { %v697_v57 = vpack.c.bf16 %v675_v54, %v672_v56 }
 0x3aa   :  { %1781 = vmatprep.mubr.bf16.mxu0 %v697_v57 }
 0x3ab   :  { %1782 = vmatmul.mubr.bf16.vlgmr.msra.gmra.mrb[4].mxu0 %v698_v58 }
 0x3ac   :  { %1786 = vmatpush3.bf16.msra.mxu0 %v1919_v19  ;;  %1801 = vmatprep.mubr.bf16.mxu0 %v678_v60 }
 0x3ad   :  { %1787 = vmatprep.subr.bf16.mxu0 %v1920_v59 }
 0x3b0   :  { %1788 = vmatpush3.bf16.msra.mxu0 %v1920_v59 }
 0x3b1   :  { %1789 = vmatprep.subr.bf16.mxu0 %v1921_v61 }
 0x3b4   :  { %1790 = vmatpush3.bf16.msra.mxu0 %v1921_v61 }
 0x3b5   :  { %1791 = vmatprep.subr.bf16.mxu0 %v1922_v62 }
 0x3b8   :  { %1792 = vmatpush3.bf16.msra.mxu0 %v1922_v62 }
 0x3b9   :  { %1793 = vmatprep.subr.bf16.mxu0 %v1923_v63 }
 0x3bc   :  { %1794 = vmatpush3.bf16.msra.mxu0 %v1923_v63 }
 0x3bd   :  { %1795 = vmatprep.subr.bf16.mxu0 %v1924_v0 }
 0x3c0   :  { %1796 = vmatpush3.bf16.msra.mxu0 %v1924_v0 }
 0x3c1   :  { %1797 = vmatprep.subr.bf16.mxu0 %v1925_v1 }
 0x3c4   :  { %1798 = vmatpush3.bf16.msra.mxu0 %v1925_v1 }
 0x3c5   :  { %1799 = vmatprep.subr.bf16.mxu0 %v1926_v2 }
 0x3c8   :  { %1800 = vmatpush3.bf16.msra.mxu0 %v1926_v2 }
 0x3cb   :  { %1802 = vmatmul.mubr.bf16.vlgmr.msra.gmra.mrb[4].mxu0 %v679_v3 }
 0x49e   :  { %v1803_v9 = vpop.f32.mrb[4].mxu0 }
 0x49f   :  { %v920_v11 = vadd.f32 %v1803_v9, %v1585_v8  ;;  %v895_v13 = vpop.f32.mrb[5].mxu0 }
 0x4a0   :  { %v918_v14 = vadd.f32 %v1585_v8, %v895_v13  ;;  %v1804_v15 = vpop.f32.mrb[6].mxu0 }
 0x4a1   :  { %v921_v55 = vadd.f32 %v1804_v15, %v1585_v8  ;;  %v898_v16 = vpop.f32.mrb[7].mxu0  ;;  %v2437_v17 = vadd.f32 %v920_v11, %v2409_v37 }
 0x4a2   :  { %v922_v18 = vadd.f32 %v918_v14, %v2412_v38  ;;  %v919_v19 = vadd.f32 %v1585_v8, %v898_v16  ;;  %v1936_v38 = vld [vmem:[#allocation5 + $0x88] sm:$0xff]  }
 0x4a3   :  { %v925_v20 = vadd.f32 %v921_v55, %v2416_v41  ;;  %v940_v27 = vrot.slane %v2437_v17, 4  ;;  %v1938_v41 = vld [vmem:[#allocation5 + $0x98] sm:$0xff]  }
 0x4a4   :  { %v938_v21 = vrot.slane %v922_v18, 4  ;;  %v923_v22 = vadd.f32 %v919_v19, %v2421_v43  ;;  %v1940_v43 = vld [vmem:[#allocation5 + $0xa8] sm:$0xff]   ;;  %v1943_v19 = vld [vmem:[#allocation8] sm:$0xff]  }
 0x4a5   :  { %v941_v25 = vrot.slane %v925_v20, 4  ;;  %v952_v47 = vpack.c.bf16 %v925_v20, %v2437_v17  ;;  %1845 = vmatprep.subr.bf16.mxu0 %v1943_v19 }
 0x4a6   :  { %v939_v28 = vrot.slane %v923_v22, 4  ;;  %v951_v40 = vpack.c.bf16 %v923_v22, %v922_v18  ;;  %1846 = vmatpush3.bf16.msra.mxu0 %v1943_v19 }
 0x4a7   :  { %v946_v30 = vsel %vm942_vm9, %v941_v25, %v938_v21  ;;  %v943_v45 = vsel %vm942_vm9, %v940_v27, %v941_v25  ;;  %v1947_v25 = vld [vmem:[#allocation8 + $0x20] sm:$0xff]  }
 0x4a8   :  { %v944_v31 = vsel %vm942_vm9, %v939_v28, %v940_v27  ;;  %v950_v23 = vmul.f32 %v1587_v26, %v946_v30  ;;  %v945_v33 = vsel %vm942_vm9, %v938_v21, %v939_v28  ;;  %v1945_v21 = vld [vmem:[#allocation8 + $0x10] sm:$0xff]   ;;  %v1948_v26 = vld [vmem:[#allocation8 + $0x28] sm:$0xff]   ;;  %v1950_v27 = vld [vmem:[#allocation8 + $0x38] sm:$0xff]  }
 0x4a9   :  { %v948_v32 = vmul.f32 %v1586_v29, %v944_v31 }
 0x4aa   :  { %v971_v37 = vpack.c.bf16 %v950_v23, %v943_v45 }
 0x4ab   :  { %v970_v36 = vpack.c.bf16 %v948_v32, %v945_v33 }
 0x4ad   :  { %1821 = vmatprep.mubr.bf16.mxu1 %v970_v36 }
 0x4ae   :  { %1822 = vmatmul.mubr.bf16.vlgmr.msra.gmra.mrb[4].mxu1 %v971_v37 }
 0x4af   :  { %1826 = vmatpush3.bf16.msra.mxu1 %v1935_v7  ;;  %1841 = vmatprep.mubr.bf16.mxu1 %v951_v40 }
 0x4b0   :  { %1827 = vmatprep.subr.bf16.mxu1 %v1936_v38 }
 0x4b3   :  { %1828 = vmatpush3.bf16.msra.mxu1 %v1936_v38 }
 0x4b4   :  { %1829 = vmatprep.subr.bf16.mxu1 %v1937_v39 }
 0x4b7   :  { %1830 = vmatpush3.bf16.msra.mxu1 %v1937_v39 }
 0x4b8   :  { %1831 = vmatprep.subr.bf16.mxu1 %v1938_v41 }
 0x4bb   :  { %1832 = vmatpush3.bf16.msra.mxu1 %v1938_v41 }
 0x4bc   :  { %1833 = vmatprep.subr.bf16.mxu1 %v1939_v42 }
 0x4bf   :  { %1834 = vmatpush3.bf16.msra.mxu1 %v1939_v42 }
 0x4c0   :  { %1835 = vmatprep.subr.bf16.mxu1 %v1940_v43 }
 0x4c3   :  { %1836 = vmatpush3.bf16.msra.mxu1 %v1940_v43 }
 0x4c4   :  { %1837 = vmatprep.subr.bf16.mxu1 %v1941_v44 }
 0x4c7   :  { %1838 = vmatpush3.bf16.msra.mxu1 %v1941_v44 }
 0x4c8   :  { %1839 = vmatprep.subr.bf16.mxu1 %v1942_v46 }
 0x4cb   :  { %1840 = vmatpush3.bf16.msra.mxu1 %v1942_v46 }
 0x4ce   :  { %1842 = vmatmul.mubr.bf16.vlgmr.msra.gmra.mrb[4].mxu1 %v952_v47 }
 0x5a1   :  { %v1843_v50 = vpop.f32.mrb[4].mxu1 }
 0x5a2   :  { %v1168_v51 = vpop.f32.mrb[5].mxu1  ;;  %v1193_v56 = vadd.f32 %v1843_v50, %v1605_v48 }
 0x5a3   :  { %v1191_v52 = vadd.f32 %v1605_v48, %v1168_v51  ;;  %v1844_v53 = vpop.f32.mrb[6].mxu1 }
 0x5a4   :  { %v1171_v54 = vpop.f32.mrb[7].mxu1  ;;  %v1194_v58 = vadd.f32 %v1844_v53, %v1605_v48  ;;  %v1197_v60 = vadd.f32 %v1193_v56, %v2437_v17 }
 0x5a5   :  { %v1192_v57 = vadd.f32 %v1605_v48, %v1171_v54  ;;  %v1195_v49 = vadd.f32 %v1191_v52, %v922_v18 }
 0x5a6   :  { %v1198_v61 = vadd.f32 %v1194_v58, %v925_v20  ;;  %v1944_v20 = vld [vmem:[#allocation8 + $0x8] sm:$0xff]  }
 0x5a7   :  { %1199 = vadd.xlane.f32.xlu0 %v1195_v49  ;;  %v1196_v59 = vadd.f32 %v1192_v57, %v923_v22  ;;  %1847 = vmatprep.subr.bf16.mxu0 %v1944_v20  ;;  %v1946_v22 = vld [vmem:[#allocation8 + $0x18] sm:$0xff]  }
 0x5a8   :  { %1848 = vmatpush3.bf16.msra.mxu0 %v1944_v20 }
 0x5a9   :  { %1201 = vadd.xlane.f32.xlu1 %v1196_v59  ;;  %1849 = vmatprep.subr.bf16.mxu0 %v1945_v21 }
 0x5ab   :  { %1203 = vadd.xlane.f32.xlu0 %v1197_v60 }
 0x5ac   :  { %1850 = vmatpush3.bf16.msra.mxu0 %v1945_v21 }
 0x5ad   :  { %1205 = vadd.xlane.f32.xlu1 %v1198_v61  ;;  %1851 = vmatprep.subr.bf16.mxu0 %v1946_v22 }
 0x5b0   :  { %1852 = vmatpush3.bf16.msra.mxu0 %v1946_v22 }
 0x5b1   :  { %1853 = vmatprep.subr.bf16.mxu0 %v1947_v25 }
 0x5b4   :  { %1854 = vmatpush3.bf16.msra.mxu0 %v1947_v25 }
 0x5b5   :  { %1855 = vmatprep.subr.bf16.mxu0 %v1948_v26 }
 0x5b8   :  { %1856 = vmatpush3.bf16.msra.mxu0 %v1948_v26 }
 0x634   :  { %v1200_v62 = vpop.xlane.xlu0 %1199 }
 0x635   :  { %v1207_v63 = vmul.f32 0.03125, %v1200_v62 }
 0x636   :  { %v1202_v0 = vpop.xlane.xlu1 %1201 }
 0x637   :  { %v1211_v1 = vsub.f32 %v1195_v49, %v1207_v63  ;;  %v1208_v2 = vmul.f32 0.03125, %v1202_v0 }
 0x638   :  { %v1204_v3 = vpop.xlane.xlu0 %1203 }
 0x639   :  { %v1212_v4 = vsub.f32 %v1196_v59, %v1208_v2  ;;  %v1209_v5 = vmul.f32 0.03125, %v1204_v3  ;;  %v1215_v6 = vmul.f32 %v2319_v35, %v1211_v1 }
 0x63a   :  { %v1206_v7 = vpop.xlane.xlu1 %1205 }
 0x63b   :  { %v1213_v8 = vsub.f32 %v1197_v60, %v1209_v5  ;;  %v1210_v9 = vmul.f32 0.03125, %v1206_v7  ;;  %v1219_v11 = vmul.f32 %v1215_v6, %v1215_v6  ;;  %v1216_v13 = vmul.f32 %v2319_v35, %v1212_v4 }
 0x63d   :  { %v1214_v14 = vsub.f32 %v1198_v61, %v1210_v9  ;;  %1223 = vadd.xlane.f32.xlu0 %v1219_v11  ;;  %v1220_v15 = vmul.f32 %v1216_v13, %v1216_v13  ;;  %v1217_v55 = vmul.f32 %v2319_v35, %v1213_v8 }
 0x63f   :  { %1225 = vadd.xlane.f32.xlu1 %v1220_v15  ;;  %v1221_v16 = vmul.f32 %v1217_v55, %v1217_v55  ;;  %v1218_v17 = vmul.f32 %v2319_v35, %v1214_v14  ;;  %v1949_v35 = vld [vmem:[#allocation8 + $0x30] sm:$0xff]  }
 0x640   :  { %1857 = vmatprep.subr.bf16.mxu0 %v1949_v35 }
 0x641   :  { %1227 = vadd.xlane.f32.xlu0 %v1221_v16  ;;  %v1222_v18 = vmul.f32 %v1218_v17, %v1218_v17  ;;  %1858 = vmatpush3.bf16.msra.mxu0 %v1949_v35 }
 0x642   :  { %1859 = vmatprep.subr.bf16.mxu0 %v1950_v27 }
 0x643   :  { %1229 = vadd.xlane.f32.xlu1 %v1222_v18 }
 0x645   :  { %1860 = vmatpush3.bf16.msra.mxu0 %v1950_v27 }
 0x6ca   :  { %v1224_v28 = vpop.xlane.xlu0 %1223 }
 0x6cb   :  { %v1231_v29 = vmul.f32 0.03125, %v1224_v28  ;;  %v1531_v28 = vsel %vm107_vm10, 1.0, %v2153_v34 }
 0x6cc   :  { %v1226_v30 = vpop.xlane.xlu1 %1225 }
 0x6cd   :  { %v1235_v31 = vadd.f32 1e-05, %v1231_v29  ;;  %v1232_v23 = vmul.f32 0.03125, %v1226_v30 }
 0x6ce   :  { %v1228_v32 = vpop.xlane.xlu0 %1227 }
 0x6cf   :  { %1975 = vrsqrt.f32 %v1235_v31  ;;  %v1236_v33 = vadd.f32 1e-05, %v1232_v23  ;;  %v1233_v36 = vmul.f32 0.03125, %v1228_v32 }
 0x6d0   :  { %v1230_v45 = vpop.xlane.xlu1 %1229 }
 0x6d1   :  { %1977 = vrsqrt.f32 %v1236_v33  ;;  %v1237_v37 = vadd.f32 1e-05, %v1233_v36  ;;  %v1234_v38 = vmul.f32 0.03125, %v1230_v45 }
 0x6d3   :  { %1979 = vrsqrt.f32 %v1237_v37  ;;  %v1238_v40 = vadd.f32 1e-05, %v1234_v38 }
 0x6d5   :  { %1981 = vrsqrt.f32 %v1238_v40 }
 0x6d9   :  { %v1976_v39 = vpop.eup %1975 }
 0x6da   :  { %v1243_v41 = vmul.f32 %v1976_v39, %v1215_v6 }
 0x6db   :  { %v1978_v42 = vpop.eup %1977 }
 0x6dc   :  { %v1244_v43 = vmul.f32 %v1978_v42, %v1216_v13  ;;  %v1247_v44 = vmul.f32 %v2347_v10, %v1243_v41 }
 0x6dd   :  { %v1980_v46 = vpop.eup %1979 }
 0x6de   :  { %v1245_v47 = vmul.f32 %v1980_v46, %v1217_v55  ;;  %v1248_v48 = vmul.f32 %v2347_v10, %v1244_v43  ;;  %v1251_v50 = vadd.f32 %v2353_v12, %v1247_v44  ;;  %v1610_v55 = vld [vmem:[%s2500_s9] ss:$0 sm:$0xff] }
 0x6df   :  { %v1982_v51 = vpop.eup %1981 }
 0x6e0   :  { %v1246_v52 = vmul.f32 %v1982_v51, %v1218_v17  ;;  %v1252_v53 = vadd.f32 %v2353_v12, %v1248_v48  ;;  %v1606_v54 = vmul.f32 -1.442695, %v1251_v50  ;;  %v1249_v56 = vmul.f32 %v2347_v10, %v1245_v47 }
 0x6e2   :  { %1983 = vpow2.f32 %v1606_v54  ;;  %v1607_v57 = vmul.f32 -1.442695, %v1252_v53  ;;  %v1250_v49 = vmul.f32 %v2347_v10, %v1246_v52  ;;  %v1253_v58 = vadd.f32 %v2353_v12, %v1249_v56 }
 0x6e4   :  { %1985 = vpow2.f32 %v1607_v57  ;;  %v1254_v59 = vadd.f32 %v2353_v12, %v1250_v49  ;;  %v1608_v60 = vmul.f32 -1.442695, %v1253_v58 }
 0x6e6   :  { %1987 = vpow2.f32 %v1608_v60  ;;  %v1609_v61 = vmul.f32 -1.442695, %v1254_v59 }
 0x6e8   :  { %1989 = vpow2.f32 %v1609_v61 }
 0x6ec   :  { %v1984_v62 = vpop.eup %1983 }
 0x6ed   :  { %v1267_v63 = vadd.f32 1.0, %v1984_v62  ;;  %v1620_v62 = vld [vmem:[%s2502_s11] ss:$0 sm:$0xff] }
 0x6ee   :  { %v1986_v0 = vpop.eup %1985 }
 0x6ef   :  { %v1268_v1 = vadd.f32 1.0, %v1986_v0  ;;  %1991 = vrcp.f32 %v1267_v63 }
 0x6f0   :  { %v1988_v2 = vpop.eup %1987 }
 0x6f1   :  { %1993 = vrcp.f32 %v1268_v1  ;;  %v1269_v3 = vadd.f32 1.0, %v1988_v2 }
 0x6f2   :  { %v1990_v4 = vpop.eup %1989 }
 0x6f3   :  { %v1270_v5 = vadd.f32 1.0, %v1990_v4  ;;  %1995 = vrcp.f32 %v1269_v3 }
 0x6f5   :  { %1997 = vrcp.f32 %v1270_v5 }
 0x6f9   :  { %v1992_v10 = vpop.eup %1991 }
 0x6fa   :  { %v1279_v7 = vmul.f32 %v1992_v10, %v1251_v50 }
 0x6fb   :  { %v1994_v6 = vpop.eup %1993 }
 0x6fc   :  { %v1280_v12 = vmul.f32 %v1994_v6, %v1252_v53 }
 0x6fd   :  { %v1996_v8 = vpop.eup %1995 }
 0x6fe   :  { %v1283_v9 = vpack.c.bf16 %v1280_v12, %v1279_v7  ;;  %v1281_v13 = vmul.f32 %v1996_v8, %v1253_v58 }
 0x6ff   :  { %v1998_v11 = vpop.eup %1997 }
 0x700   :  { %1861 = vmatprep.mubr.bf16.mxu0 %v1283_v9  ;;  %v1282_v14 = vmul.f32 %v1998_v11, %v1254_v59  ;;  %v1619_v59 = vld [vmem:[%s2501_s10] ss:$0 sm:$0xff]  ;;  %s2154_s10 = smov [#allocation10]  }
 0x701   :  { %s1516_s11 = sshll.u32 %s2154_s10, 4  ;;  %s1517_s11 = int_to_ptr.vmem [resolvable:$true] %s1516_s11 }
 0x702   :  { %v1284_v15 = vpack.c.bf16 %v1282_v14, %v1281_v13  ;;  %s2115_s14 = scalar_lea.vmem %s1517_s11, 512  ;;  %p2120_p5 = scmp.lt.s32.totalorder %s1517_s11, %s1517_s11 }
 0x703   :  { %p2116_p4 = scmp.ne.s32.totalorder %s1517_s11, %s2115_s14  ;;  %p2121_p6 = scmp.lt.s32.totalorder %s2115_s14, %s2115_s14 }
 0x704   :  { %1862 = vmatmul.mubr.bf16.vlgmr.msra.gmra.mrb[8].mxu0 %v1284_v15 }
 0x705   :  { %p2122_p7 = por %p2121_p6, %p2120_p5 }
 0x707   :  { %p2123_p8 = pnand %p2122_p7, %p2116_p4 }
 0x7d7   :  { %v1863_v16 = vpop.f32.mrb[8].mxu0 }
 0x7d8   :  { %v1390_v17 = vpop.f32.mrb[9].mxu0  ;;  %v1399_v22 = vadd.f32 %v1863_v16, %v1610_v55 }
 0x7d9   :  { %v1391_v18 = vadd.f32 %v1610_v55, %v1390_v17  ;;  %v1864_v19 = vpop.f32.mrb[10].mxu0 }
 0x7da   :  { %v1393_v20 = vpop.f32.mrb[11].mxu0  ;;  %v1402_v25 = vadd.f32 %v1864_v19, %v1610_v55 }
 0x7db   :  { %v1394_v21 = vadd.f32 %v1610_v55, %v1393_v20  ;;  %1407 = vadd.xlane.f32.xlu0 %v1391_v18 }
 0x7dd   :  { %1409 = vadd.xlane.f32.xlu1 %v1394_v21 }
 0x7df   :  { %1411 = vadd.xlane.f32.xlu0 %v1399_v22 }
 0x7e1   :  { %1413 = vadd.xlane.f32.xlu1 %v1402_v25 }
 0x868   :  { %v1408_v26 = vpop.xlane.xlu0 %1407 }
 0x869   :  { %v1415_v35 = vmul.f32 0.125, %v1408_v26 }
 0x86a   :  { %v1410_v27 = vpop.xlane.xlu1 %1409 }
 0x86b   :  { %v1419_v29 = vsub.f32 %v1391_v18, %v1415_v35  ;;  %v1416_v30 = vmul.f32 0.125, %v1410_v27 }
 0x86c   :  { %v1412_v31 = vpop.xlane.xlu0 %1411 }
 0x86d   :  { %v1420_v23 = vsub.f32 %v1394_v21, %v1416_v30  ;;  %v1417_v32 = vmul.f32 0.125, %v1412_v31  ;;  %v1423_v33 = vmul.f32 %v1531_v28, %v1419_v29 }
 0x86e   :  { %v1414_v36 = vpop.xlane.xlu1 %1413 }
 0x86f   :  { %v1421_v45 = vsub.f32 %v1399_v22, %v1417_v32  ;;  %v1418_v37 = vmul.f32 0.125, %v1414_v36  ;;  %v1427_v38 = vmul.f32 %v1423_v33, %v1423_v33  ;;  %v1424_v40 = vmul.f32 %v1531_v28, %v1420_v23  ;;  %v2024_v23 = vld [vmem:[#allocation2 + $0x8] sm:$0xff] }
 0x871   :  { %v1422_v39 = vsub.f32 %v1402_v25, %v1418_v37  ;;  %1431 = vadd.xlane.f32.xlu0 %v1427_v38  ;;  %v1428_v41 = vmul.f32 %v1424_v40, %v1424_v40  ;;  %v1425_v24 = vmul.f32 %v1531_v28, %v1421_v45  ;;  %v2025_v45 = vld [vmem:[#allocation2 + $0x10] sm:$0xff]  ;;  %v2026_v38 = vld [vmem:[#allocation2 + $0x18] sm:$0xff] }
 0x873   :  { %1433 = vadd.xlane.f32.xlu1 %v1428_v41  ;;  %v1429_v42 = vmul.f32 %v1425_v24, %v1425_v24  ;;  %v1426_v43 = vmul.f32 %v1531_v28, %v1422_v39  ;;  %v2023_v28 = vld [vmem:[#allocation2] sm:$0xff] }
 0x875   :  { %1435 = vadd.xlane.f32.xlu0 %v1429_v42  ;;  %v1430_v34 = vmul.f32 %v1426_v43, %v1426_v43 }
 0x877   :  { %1437 = vadd.xlane.f32.xlu1 %v1430_v34 }
 0x8fe   :  { %v1432_v44 = vpop.xlane.xlu0 %1431 }
 0x8ff   :  { %v1439_v46 = vmul.f32 0.125, %v1432_v44 }
 0x900   :  { %v1434_v47 = vpop.xlane.xlu1 %1433 }
 0x901   :  { %v1443_v48 = vadd.f32 1e-05, %v1439_v46  ;;  %v1440_v50 = vmul.f32 0.125, %v1434_v47 }
 0x902   :  { %v1436_v51 = vpop.xlane.xlu0 %1435 }
 0x903   :  { %1999 = vrsqrt.f32 %v1443_v48  ;;  %v1444_v52 = vadd.f32 1e-05, %v1440_v50  ;;  %v1441_v53 = vmul.f32 0.125, %v1436_v51 }
 0x904   :  { %v1438_v54 = vpop.xlane.xlu1 %1437 }
 0x905   :  { %2001 = vrsqrt.f32 %v1444_v52  ;;  %v1445_v56 = vadd.f32 1e-05, %v1441_v53  ;;  %v1442_v57 = vmul.f32 0.125, %v1438_v54 }
 0x907   :  { %2003 = vrsqrt.f32 %v1445_v56  ;;  %v1446_v49 = vadd.f32 1e-05, %v1442_v57 }
 0x909   :  { %2005 = vrsqrt.f32 %v1446_v49 }
 0x90d   :  { %v2000_v58 = vpop.eup %1999 }
 0x90e   :  { %v1451_v60 = vmul.f32 %v2000_v58, %v1423_v33 }
 0x90f   :  { %v2002_v61 = vpop.eup %2001 }
 0x910   :  { %v1461_v63 = vmul.f32 %v1619_v59, %v1451_v60  ;;  %v1452_v0 = vmul.f32 %v2002_v61, %v1424_v40 }
 0x911   :  { %v2004_v1 = vpop.eup %2003 }
 0x912   :  { %v1462_v2 = vmul.f32 %v1619_v59, %v1452_v0  ;;  %v1453_v3 = vmul.f32 %v2004_v1, %v1425_v24  ;;  %v1471_v4 = vadd.f32 %v1620_v62, %v1461_v63 }
 0x913   :  { %v2006_v5 = vpop.eup %2005 }
 0x914   :  { %v1463_v10 = vmul.f32 %v1619_v59, %v1453_v3  ;;  %v1454_v6 = vmul.f32 %v2006_v5, %v1426_v43  ;;  %v1472_v7 = vadd.f32 %v1620_v62, %v1462_v2  ;;  %v1621_v12 = vmul.f32 -1.442695, %v1471_v4 }
 0x916   :  { %v1464_v8 = vmul.f32 %v1619_v59, %v1454_v6  ;;  %v1473_v9 = vadd.f32 %v1620_v62, %v1463_v10  ;;  %2007 = vpow2.f32 %v1621_v12  ;;  %v1622_v11 = vmul.f32 -1.442695, %v1472_v7 }
 0x918   :  { %v1474_v13 = vadd.f32 %v1620_v62, %v1464_v8  ;;  %2009 = vpow2.f32 %v1622_v11  ;;  %v1623_v14 = vmul.f32 -1.442695, %v1473_v9 }
 0x91a   :  { %2011 = vpow2.f32 %v1623_v14  ;;  %v1624_v15 = vmul.f32 -1.442695, %v1474_v13 }
 0x91c   :  { %2013 = vpow2.f32 %v1624_v15 }
 0x920   :  { %v2008_v55 = vpop.eup %2007 }
 0x921   :  { %v1487_v16 = vadd.f32 1.0, %v2008_v55 }
 0x922   :  { %v2010_v17 = vpop.eup %2009 }
 0x923   :  { %v1488_v18 = vadd.f32 1.0, %v2010_v17  ;;  %2015 = vrcp.f32 %v1487_v16 }
 0x924   :  { %v2012_v19 = vpop.eup %2011 }
 0x925   :  { %v1489_v20 = vadd.f32 1.0, %v2012_v19  ;;  %2017 = vrcp.f32 %v1488_v18 }
 0x926   :  { %v2014_v21 = vpop.eup %2013 }
 0x927   :  { %v1490_v22 = vadd.f32 1.0, %v2014_v21  ;;  %2019 = vrcp.f32 %v1489_v20 }
 0x929   :  { %2021 = vrcp.f32 %v1490_v22 }
 0x92d   :  { %v2016_v25 = vpop.eup %2015 }
 0x92e   :  { %v1499_v26 = vmul.f32 %v2016_v25, %v1471_v4 }
 0x92f   :  { %v2018_v35 = vpop.eup %2017 }
 0x930   :  { %v1500_v27 = vmul.f32 %v2018_v35, %v1472_v7  ;;  %v1503_v29 = vadd.f32 %v2023_v28, %v1499_v26 }
 0x931   :  { %v2020_v30 = vpop.eup %2019 }
 0x932   :  { %v1501_v31 = vmul.f32 %v2020_v30, %v1473_v9  ;;  %v1504_v32 = vadd.f32 %v2024_v23, %v1500_v27  ;;  %1507 = vst [vmem:[#allocation10] sm:$0xff] %v1503_v29 }
 0x933   :  { %v2022_v33 = vpop.eup %2021 }
 0x934   :  { %v1502_v36 = vmul.f32 %v2022_v33, %v1474_v13  ;;  %v1505_v37 = vadd.f32 %v2025_v45, %v1501_v31  ;;  %1508 = vst [vmem:[#allocation10 + $0x8] sm:$0xff] %v1504_v32 }
 0x936   :  { %v1506_v40 = vadd.f32 %v2026_v38, %v1502_v36  ;;  %1509 = vst [vmem:[#allocation10 + $0x10] sm:$0xff] %v1505_v37 }
 0x938   :  { %1510 = vst [vmem:[#allocation10 + $0x18] sm:$0xff] %v1506_v40 }
 0x939   :  { %2126 = shalt.err (!%p2123_p8)
}
 0x93a   :  { %s2127_s29 = scalar_lea.hbm %s2503_s12, 512 }
 0x93b   :  { %p2128_p9 = scmp.ne.s32.totalorder %s2503_s12, %s2127_s29  ;;  %p2131_p10 = scmp.lt.u32.totalorder %s2127_s29, %s2503_s12 }
 0x93d   :  { %p2133_p11 = pnand %p2131_p10, %p2128_p9 }
 0x93f   :  { %2136 = shalt.err (!%p2133_p11)
}
 0x940   :  { %1522 = dma.vmem_to_hbm [thread:$0]  %s1517_s11, 512, %s2503_s12, [#allocation4], %s2149_s5, %s2149_s5, %s2150_s22  }
 0x941   :  { %2143 = dma.done.wait [#allocation4], 512  }
 0x942   :  { %2144 = vsyncadd [#allocation4], 4294966784 }
 0x943   :  { %1526 = vsyncpa [#allocation3], 1 }
 0x944   :  { %1527 = vsyncpa [#allocation6], 1 }
 0x945   :  { %1528 = vsyncpa [#allocation9], 1 }
 0x946   :  { %1529 = vsyncpa [#allocation4], 1 }

</bundles_post_ra>
